<compile_context>
chip_gen: v6e
topology: v6e:2x2x1
jax: 0.10.0
libtpu: 0.0.40
codegen_flags: <defaults>
</compile_context>

<pallas_src>
import functools

import jax
import jax.numpy as jnp
from jax.experimental import pallas as pl
from jax.experimental.pallas import tpu as pltpu


# ----------------------------------------------------------------------------
# Fused block kernel (built per static configuration)
# ----------------------------------------------------------------------------
def _make_block_kernel(*, n, ho, wo, cin, cout, has_down):
    m = n * ho * wo

    def kernel(*refs):
        if has_down:
            (p1_ref, xr_ref, w1_ref, b1_ref, w2_ref, b2_ref, sw1_ref, sb1_ref,
             sw2_ref, sb2_ref, pool_ref, dw_ref, db_ref, o_ref, h1_ref) = refs
        else:
            (p1_ref, xr_ref, w1_ref, b1_ref, w2_ref, b2_ref, sw1_ref, sb1_ref,
             sw2_ref, sb2_ref, pool_ref, o_ref, h1_ref) = refs

        # ---- conv1: 3x3, stride s (folded into the im2col) + BN bias + ReLU --
        # One (m, 9*cin) x (9*cin, cout) bf16 MXU matmul, f32 accumulation.
        h1 = jnp.dot(p1_ref[...], w1_ref[...],
                     preferred_element_type=jnp.float32) + b1_ref[...]
        h1 = jnp.maximum(h1, 0.0)                                  # (m, cout) f32

        # Stage conv1 output in a zero-padded VMEM scratch so conv2's 9 taps are
        # plain unit-stride slices (the border ring is conv2's zero padding).
        h1_ref[...] = jnp.zeros_like(h1_ref)
        h1_ref[:, 1:ho + 1, 1:wo + 1, :] = h1.reshape(n, ho, wo, cout)

        # ---- conv2: 3x3, stride 1, pad 1 + folded-BN bias (no ReLU) ----------
        acc2 = jnp.zeros((m, cout), jnp.float32)
        for kh in range(3):
            for kw in range(3):
                patch = h1_ref[:, kh:kh + ho, kw:kw + wo, :]       # (n,ho,wo,cout) f32
                acc2 = acc2 + jnp.dot(
                    patch.reshape(m, cout).astype(jnp.bfloat16),
                    w2_ref[kh * 3 + kw],
                    preferred_element_type=jnp.float32)
        out2 = acc2 + b2_ref[...]                                  # (m, cout) f32

        # ---- SE: GAP (as MXU matmul) -> FC1 -> ReLU -> FC2 -> sigmoid --------
        pooled = jnp.dot(pool_ref[...], out2,
                         preferred_element_type=jnp.float32)       # (n, cout)
        hfc = jnp.maximum(
            jnp.dot(pooled.astype(jnp.bfloat16), sw1_ref[...],
                    preferred_element_type=jnp.float32) + sb1_ref[...], 0.0)
        z = jnp.dot(hfc.astype(jnp.bfloat16), sw2_ref[...],
                    preferred_element_type=jnp.float32) + sb2_ref[...]
        gate = pl.reciprocal(1.0 + jnp.exp(-z), approx=True)       # sigmoid on EUP

        # ---- residual branch: identity, or 1x1 conv (stride s) + BN bias -----
        # xr_ref holds x sampled at the stride grid (= center im2col tap).
        if has_down:
            residual = jnp.dot(xr_ref[...], dw_ref[...],
                               preferred_element_type=jnp.float32) + db_ref[...]
        else:
            residual = xr_ref[...].astype(jnp.float32)

        # ---- channel rescale + residual add + final ReLU ---------------------
        y = out2.reshape(n, ho * wo, cout) * gate[:, None, :] \
            + residual.reshape(n, ho * wo, cout)
        o_ref[...] = jnp.maximum(y, 0.0).reshape(n, ho, wo, cout).astype(o_ref.dtype)

    return kernel


# ----------------------------------------------------------------------------
# Public forward (NCHW in / NCHW out, like the PyTorch module)
# ----------------------------------------------------------------------------
def cifar_se_basic_block(x_nchw, params, inplanes, planes, stride):
    n, cin, h, w = x_nchw.shape
    assert cin == inplanes
    s = stride
    ho = (h - 1) // s + 1
    wo = (w - 1) // s + 1
    m = n * ho * wo
    has_down = inplanes != planes
    if not has_down and s != 1:
        # PyTorch block only builds `downsample` when inplanes != planes, so an
        # identity residual with stride != 1 would shape-error there as well.
        raise ValueError("identity residual requires stride == 1")

    # Input prep (one small fused XLA pass): NCHW->NHWC, bf16 cast, pad=1, and
    # the 3x3/stride-s im2col so the in-kernel conv1 is a single K=9*cin matmul.
    x = jnp.transpose(x_nchw, (0, 2, 3, 1)).astype(jnp.bfloat16)
    xp = jnp.pad(x, ((0, 0), (1, 1), (1, 1), (0, 0)))
    taps = [xp[:, kh:kh + (ho - 1) * s + 1:s, kw:kw + (wo - 1) * s + 1:s, :]
            for kh in range(3) for kw in range(3)]                  # each (n,ho,wo,cin)
    patches = jnp.stack(taps, axis=3).reshape(m, 9 * cin)           # (m, 9*cin) bf16
    xres = taps[4].reshape(m, cin)                                  # x at the stride grid

    # Block-diagonal mean matrix: SE global average pool as an MXU matmul.
    pool_mat = jnp.repeat(jnp.eye(n, dtype=jnp.float32), ho * wo, axis=1) / float(ho * wo)

    inputs = [patches, xres,
              params["conv1_w"], params["bn1_bias"],
              params["conv2_w"], params["bn2_bias"],
              params["se_w1"], params["se_b1"], params["se_w2"], params["se_b2"],
              pool_mat]
    if has_down:
        inputs += [params["down_w"], params["bnd_bias"]]

    kernel = _make_block_kernel(n=n, ho=ho, wo=wo, cin=cin, cout=planes,
                                has_down=has_down)
    vmem = pl.BlockSpec(memory_space=pltpu.MemorySpace.VMEM)
    y_nhwc = pl.pallas_call(
        kernel,
        out_shape=jax.ShapeDtypeStruct((n, ho, wo, planes), jnp.float32),
        in_specs=[vmem] * len(inputs),
        out_specs=vmem,
        scratch_shapes=[pltpu.VMEM((n, ho + 2, wo + 2, planes), jnp.float32)],
    )(*inputs)
    # TODO(synk): if batch/spatial size grows, tile M = n*ho*wo with a grid axis
    # marked dimension_semantics=("parallel",) instead of whole-array VMEM blocks.
    return jnp.transpose(y_nhwc, (0, 3, 1, 2))   # NHWC -> NCHW (module API)


# ----------------------------------------------------------------------------
# Parameters (PyTorch-style init, converted to kernel-ready layout)
# ----------------------------------------------------------------------------
def _fold_bn(gamma, beta, mean, var, eps=1e-5):
    scale = gamma / jnp.sqrt(var + eps)
    bias = beta - mean * scale
    return scale, bias


def make_params(key, inplanes, planes, reduction):
    ks = jax.random.split(key, 10)
    cr = planes // reduction

    def bn_params(k):
        k1, k2, k3, k4 = jax.random.split(k, 4)
        gamma = 1.0 + 0.1 * jax.random.normal(k1, (planes,), jnp.float32)
        beta = 0.1 * jax.random.normal(k2, (planes,), jnp.float32)
        mean = 0.1 * jax.random.normal(k3, (planes,), jnp.float32)
        var = 0.5 + jnp.abs(jax.random.normal(k4, (planes,), jnp.float32))
        return _fold_bn(gamma, beta, mean, var)

    p = {}
    # conv weights: PyTorch OIHW -> HWIO, BN scale folded in, taps flattened, bf16
    w1 = 0.1 * jax.random.normal(ks[0], (planes, inplanes, 3, 3), jnp.float32)
    w2 = 0.1 * jax.random.normal(ks[1], (planes, planes, 3, 3), jnp.float32)
    s1, b1 = bn_params(ks[2])
    s2, b2 = bn_params(ks[3])
    w1 = jnp.transpose(w1, (2, 3, 1, 0)) * s1[None, None, None, :]
    w2 = jnp.transpose(w2, (2, 3, 1, 0)) * s2[None, None, None, :]
    p["conv1_w"] = w1.reshape(9 * inplanes, planes).astype(jnp.bfloat16)
    p["conv2_w"] = w2.reshape(9, planes, planes).astype(jnp.bfloat16)
    p["bn1_bias"] = b1.reshape(1, planes)
    p["bn2_bias"] = b2.reshape(1, planes)

    # SE layer: Linear(C, C//r) -> ReLU -> Linear(C//r, C) -> Sigmoid (with biases)
    fc1_w = 0.2 * jax.random.normal(ks[4], (cr, planes), jnp.float32)   # (out, in)
    fc1_b = 0.1 * jax.random.normal(ks[5], (cr,), jnp.float32)
    fc2_w = 0.2 * jax.random.normal(ks[6], (planes, cr), jnp.float32)
    fc2_b = 0.1 * jax.random.normal(ks[7], (planes,), jnp.float32)
    p["se_w1"] = fc1_w.T.astype(jnp.bfloat16)      # (C, Cr)
    p["se_b1"] = fc1_b.reshape(1, cr)
    p["se_w2"] = fc2_w.T.astype(jnp.bfloat16)      # (Cr, C)
    p["se_b2"] = fc2_b.reshape(1, planes)

    if inplanes != planes:
        wd = 0.1 * jax.random.normal(ks[8], (planes, inplanes, 1, 1), jnp.float32)
        sd, bd = bn_params(ks[9])
        wd = jnp.transpose(wd, (2, 3, 1, 0)).reshape(inplanes, planes) * sd[None, :]
        p["down_w"] = wd.astype(jnp.bfloat16)
        p["bnd_bias"] = bd.reshape(1, planes)
    return p


# ----------------------------------------------------------------------------
# Pure-JAX/XLA reference (same bf16-rounded weights) for correctness checking
# ----------------------------------------------------------------------------
def reference_block(x_nchw, params, inplanes, planes, stride):
    x = jnp.transpose(x_nchw, (0, 2, 3, 1)).astype(jnp.bfloat16).astype(jnp.float32)

    def conv(a, w_hwio, s, pad):
        return jax.lax.conv_general_dilated(
            a, w_hwio, (s, s), ((pad, pad), (pad, pad)),
            dimension_numbers=("NHWC", "HWIO", "NHWC"),
            precision=jax.lax.Precision.HIGHEST)

    w1 = params["conv1_w"].astype(jnp.float32).reshape(3, 3, inplanes, planes)
    w2 = params["conv2_w"].astype(jnp.float32).reshape(3, 3, planes, planes)
    out = jnp.maximum(conv(x, w1, stride, 1) + params["bn1_bias"].reshape(1, 1, 1, -1), 0.0)
    out = conv(out, w2, 1, 1) + params["bn2_bias"].reshape(1, 1, 1, -1)

    pooled = out.mean(axis=(1, 2))
    hfc = jnp.maximum(pooled @ params["se_w1"].astype(jnp.float32)
                      + params["se_b1"].reshape(-1), 0.0)
    z = hfc @ params["se_w2"].astype(jnp.float32) + params["se_b2"].reshape(-1)
    gate = jax.nn.sigmoid(z)

    if inplanes != planes:
        wd = params["down_w"].astype(jnp.float32).reshape(1, 1, inplanes, planes)
        res = conv(x, wd, stride, 0) + params["bnd_bias"].reshape(1, 1, 1, -1)
    else:
        res = x
    y = jnp.maximum(out * gate[:, None, None, :] + res, 0.0)
    return jnp.transpose(y, (0, 3, 1, 2))


if __name__ == "__main__":
    key = jax.random.PRNGKey(0)
    k_x, k_p = jax.random.split(key)

    N, inplanes, H, W = 2, 16, 16, 16
    planes, stride, reduction = 32, 2, 4

    x = jax.random.normal(k_x, (N, inplanes, H, W), jnp.float32)   # NCHW like PyTorch
    params = make_params(k_p, inplanes, planes, reduction)

    fwd = jax.jit(functools.partial(cifar_se_basic_block,
                                    inplanes=inplanes, planes=planes, stride=stride))
    y = fwd(x, params)
    jax.block_until_ready(y)

    expected_shape = (N, planes, (H - 1) // stride + 1, (W - 1) // stride + 1)
    assert y.shape == expected_shape, (y.shape, expected_shape)
    assert bool(jnp.all(y >= 0.0)), "final ReLU violated"

    y_ref = reference_block(x, params, inplanes, planes, stride)
    max_err = float(jnp.max(jnp.abs(y - y_ref)))
    assert max_err < 1e-1, f"mismatch vs XLA reference: max abs err {max_err}"

    print("KERNEL_OK")
</pallas_src>

<mosaic_0001>
module attributes {stable_mosaic.version = 11 : i64} {
  func.func @kernel(%arg0: memref<128x144xbf16, #tpu.memory_space<vmem>>, %arg1: memref<128x16xbf16, #tpu.memory_space<vmem>>, %arg2: memref<144x32xbf16, #tpu.memory_space<vmem>>, %arg3: memref<1x32xf32, #tpu.memory_space<vmem>>, %arg4: memref<9x32x32xbf16, #tpu.memory_space<vmem>>, %arg5: memref<1x32xf32, #tpu.memory_space<vmem>>, %arg6: memref<32x8xbf16, #tpu.memory_space<vmem>>, %arg7: memref<1x8xf32, #tpu.memory_space<vmem>>, %arg8: memref<8x32xbf16, #tpu.memory_space<vmem>>, %arg9: memref<1x32xf32, #tpu.memory_space<vmem>>, %arg10: memref<2x128xf32, #tpu.memory_space<vmem>>, %arg11: memref<16x32xbf16, #tpu.memory_space<vmem>>, %arg12: memref<1x32xf32, #tpu.memory_space<vmem>>, %arg13: memref<2x8x8x32xf32, #tpu.memory_space<vmem>>, %arg14: memref<2x10x10x32xf32, #tpu.memory_space<vmem>>) attributes {dimension_semantics = [], scalar_prefetch = 0 : i64, scratch_operands = 1 : i64, tpu.core_type = #tpu.core_type<tc>} {
    %c0 = arith.constant 0 : index
    %c0_0 = arith.constant 0 : index
    %0 = vector.load %arg0[%c0, %c0_0] : memref<128x144xbf16, #tpu.memory_space<vmem>>, vector<128x144xbf16>
    %c0_1 = arith.constant 0 : index
    %c0_2 = arith.constant 0 : index
    %1 = vector.load %arg2[%c0_1, %c0_2] : memref<144x32xbf16, #tpu.memory_space<vmem>>, vector<144x32xbf16>
    %cst = arith.constant dense<0.000000e+00> : vector<128x32xf32>
    %2 = tpu.matmul %0, %1, %cst {dimension_numbers = #tpu.dot_dimension_numbers<[1], [0], [0], [1], [0, 0, 1, 1], [], []>} : vector<128x144xbf16>, vector<144x32xbf16>, vector<128x32xf32> -> vector<128x32xf32>
    %c0_3 = arith.constant 0 : index
    %c0_4 = arith.constant 0 : index
    %3 = vector.load %arg3[%c0_3, %c0_4] : memref<1x32xf32, #tpu.memory_space<vmem>>, vector<1x32xf32>
    %4 = vector.broadcast %3 : vector<1x32xf32> to vector<128x32xf32>
    %5 = arith.addf %2, %4 : vector<128x32xf32>
    %cst_5 = arith.constant 0.000000e+00 : f32
    %6 = vector.broadcast %cst_5 : f32 to vector<128x32xf32>
    %7 = arith.maximumf %5, %6 : vector<128x32xf32>
    %cst_6 = arith.constant 0.000000e+00 : f32
    %8 = vector.broadcast %cst_6 : f32 to vector<2x10x10x32xf32>
    %c0_7 = arith.constant 0 : index
    %c0_8 = arith.constant 0 : index
    %c0_9 = arith.constant 0 : index
    %c0_10 = arith.constant 0 : index
    %9 = vector.load %arg14[%c0_7, %c0_8, %c0_9, %c0_10] : memref<2x10x10x32xf32, #tpu.memory_space<vmem>>, vector<2x10x10x32xf32>
    tpu.vector_store %arg14[%c0_7, %c0_8, %c0_9, %c0_10], %8 {strides = array<i32>} : memref<2x10x10x32xf32, #tpu.memory_space<vmem>>, vector<2x10x10x32xf32>,
    %10 = vector.shape_cast %7 : vector<128x32xf32> to vector<2x8x8x32xf32>
    %c0_11 = arith.constant 0 : index
    %c1 = arith.constant 1 : index
    %c1_12 = arith.constant 1 : index
    %c0_13 = arith.constant 0 : index
    %11 = vector.load %arg14[%c0_11, %c1, %c1_12, %c0_13] : memref<2x10x10x32xf32, #tpu.memory_space<vmem>>, vector<2x8x8x32xf32>
    tpu.vector_store %arg14[%c0_11, %c1, %c1_12, %c0_13], %10 {strides = array<i32>} : memref<2x10x10x32xf32, #tpu.memory_space<vmem>>, vector<2x8x8x32xf32>,
    %cst_14 = arith.constant 0.000000e+00 : f32
    %12 = vector.broadcast %cst_14 : f32 to vector<128x32xf32>
    %c0_15 = arith.constant 0 : index
    %c0_16 = arith.constant 0 : index
    %c0_17 = arith.constant 0 : index
    %c0_18 = arith.constant 0 : index
    %13 = vector.load %arg14[%c0_15, %c0_16, %c0_17, %c0_18] : memref<2x10x10x32xf32, #tpu.memory_space<vmem>>, vector<2x8x8x32xf32>
    %14 = vector.shape_cast %13 : vector<2x8x8x32xf32> to vector<128x32xf32>
    %15 = arith.truncf %14 : vector<128x32xf32> to vector<128x32xbf16>
    %c0_19 = arith.constant 0 : index
    %c0_20 = arith.constant 0 : index
    %c0_21 = arith.constant 0 : index
    %16 = vector.load %arg4[%c0_19, %c0_20, %c0_21] : memref<9x32x32xbf16, #tpu.memory_space<vmem>>, vector<1x32x32xbf16>
    %17 = vector.shape_cast %16 : vector<1x32x32xbf16> to vector<32x32xbf16>
    %cst_22 = arith.constant dense<0.000000e+00> : vector<128x32xf32>
    %18 = tpu.matmul %15, %17, %cst_22 {dimension_numbers = #tpu.dot_dimension_numbers<[1], [0], [0], [1], [0, 0, 1, 1], [], []>} : vector<128x32xbf16>, vector<32x32xbf16>, vector<128x32xf32> -> vector<128x32xf32>
    %19 = arith.addf %12, %18 : vector<128x32xf32>
    %c0_23 = arith.constant 0 : index
    %c0_24 = arith.constant 0 : index
    %c1_25 = arith.constant 1 : index
    %c0_26 = arith.constant 0 : index
    %20 = vector.load %arg14[%c0_23, %c0_24, %c1_25, %c0_26] : memref<2x10x10x32xf32, #tpu.memory_space<vmem>>, vector<2x8x8x32xf32>
    %21 = vector.shape_cast %20 : vector<2x8x8x32xf32> to vector<128x32xf32>
    %22 = arith.truncf %21 : vector<128x32xf32> to vector<128x32xbf16>
    %c1_27 = arith.constant 1 : index
    %c0_28 = arith.constant 0 : index
    %c0_29 = arith.constant 0 : index
    %23 = vector.load %arg4[%c1_27, %c0_28, %c0_29] : memref<9x32x32xbf16, #tpu.memory_space<vmem>>, vector<1x32x32xbf16>
    %24 = vector.shape_cast %23 : vector<1x32x32xbf16> to vector<32x32xbf16>
    %cst_30 = arith.constant dense<0.000000e+00> : vector<128x32xf32>
    %25 = tpu.matmul %22, %24, %cst_30 {dimension_numbers = #tpu.dot_dimension_numbers<[1], [0], [0], [1], [0, 0, 1, 1], [], []>} : vector<128x32xbf16>, vector<32x32xbf16>, vector<128x32xf32> -> vector<128x32xf32>
    %26 = arith.addf %19, %25 : vector<128x32xf32>
    %c0_31 = arith.constant 0 : index
    %c0_32 = arith.constant 0 : index
    %c2 = arith.constant 2 : index
    %c0_33 = arith.constant 0 : index
    %27 = vector.load %arg14[%c0_31, %c0_32, %c2, %c0_33] : memref<2x10x10x32xf32, #tpu.memory_space<vmem>>, vector<2x8x8x32xf32>
    %28 = vector.shape_cast %27 : vector<2x8x8x32xf32> to vector<128x32xf32>
    %29 = arith.truncf %28 : vector<128x32xf32> to vector<128x32xbf16>
    %c2_34 = arith.constant 2 : index
    %c0_35 = arith.constant 0 : index
    %c0_36 = arith.constant 0 : index
    %30 = vector.load %arg4[%c2_34, %c0_35, %c0_36] : memref<9x32x32xbf16, #tpu.memory_space<vmem>>, vector<1x32x32xbf16>
    %31 = vector.shape_cast %30 : vector<1x32x32xbf16> to vector<32x32xbf16>
    %cst_37 = arith.constant dense<0.000000e+00> : vector<128x32xf32>
    %32 = tpu.matmul %29, %31, %cst_37 {dimension_numbers = #tpu.dot_dimension_numbers<[1], [0], [0], [1], [0, 0, 1, 1], [], []>} : vector<128x32xbf16>, vector<32x32xbf16>, vector<128x32xf32> -> vector<128x32xf32>
    %33 = arith.addf %26, %32 : vector<128x32xf32>
    %c0_38 = arith.constant 0 : index
    %c1_39 = arith.constant 1 : index
    %c0_40 = arith.constant 0 : index
    %c0_41 = arith.constant 0 : index
    %34 = vector.load %arg14[%c0_38, %c1_39, %c0_40, %c0_41] : memref<2x10x10x32xf32, #tpu.memory_space<vmem>>, vector<2x8x8x32xf32>
    %35 = vector.shape_cast %34 : vector<2x8x8x32xf32> to vector<128x32xf32>
    %36 = arith.truncf %35 : vector<128x32xf32> to vector<128x32xbf16>
    %c3 = arith.constant 3 : index
    %c0_42 = arith.constant 0 : index
    %c0_43 = arith.constant 0 : index
    %37 = vector.load %arg4[%c3, %c0_42, %c0_43] : memref<9x32x32xbf16, #tpu.memory_space<vmem>>, vector<1x32x32xbf16>
    %38 = vector.shape_cast %37 : vector<1x32x32xbf16> to vector<32x32xbf16>
    %cst_44 = arith.constant dense<0.000000e+00> : vector<128x32xf32>
    %39 = tpu.matmul %36, %38, %cst_44 {dimension_numbers = #tpu.dot_dimension_numbers<[1], [0], [0], [1], [0, 0, 1, 1], [], []>} : vector<128x32xbf16>, vector<32x32xbf16>, vector<128x32xf32> -> vector<128x32xf32>
    %40 = arith.addf %33, %39 : vector<128x32xf32>
    %c0_45 = arith.constant 0 : index
    %c1_46 = arith.constant 1 : index
    %c1_47 = arith.constant 1 : index
    %c0_48 = arith.constant 0 : index
    %41 = vector.load %arg14[%c0_45, %c1_46, %c1_47, %c0_48] : memref<2x10x10x32xf32, #tpu.memory_space<vmem>>, vector<2x8x8x32xf32>
    %42 = vector.shape_cast %41 : vector<2x8x8x32xf32> to vector<128x32xf32>
    %43 = arith.truncf %42 : vector<128x32xf32> to vector<128x32xbf16>
    %c4 = arith.constant 4 : index
    %c0_49 = arith.constant 0 : index
    %c0_50 = arith.constant 0 : index
    %44 = vector.load %arg4[%c4, %c0_49, %c0_50] : memref<9x32x32xbf16, #tpu.memory_space<vmem>>, vector<1x32x32xbf16>
    %45 = vector.shape_cast %44 : vector<1x32x32xbf16> to vector<32x32xbf16>
    %cst_51 = arith.constant dense<0.000000e+00> : vector<128x32xf32>
    %46 = tpu.matmul %43, %45, %cst_51 {dimension_numbers = #tpu.dot_dimension_numbers<[1], [0], [0], [1], [0, 0, 1, 1], [], []>} : vector<128x32xbf16>, vector<32x32xbf16>, vector<128x32xf32> -> vector<128x32xf32>
    %47 = arith.addf %40, %46 : vector<128x32xf32>
    %c0_52 = arith.constant 0 : index
    %c1_53 = arith.constant 1 : index
    %c2_54 = arith.constant 2 : index
    %c0_55 = arith.constant 0 : index
    %48 = vector.load %arg14[%c0_52, %c1_53, %c2_54, %c0_55] : memref<2x10x10x32xf32, #tpu.memory_space<vmem>>, vector<2x8x8x32xf32>
    %49 = vector.shape_cast %48 : vector<2x8x8x32xf32> to vector<128x32xf32>
    %50 = arith.truncf %49 : vector<128x32xf32> to vector<128x32xbf16>
    %c5 = arith.constant 5 : index
    %c0_56 = arith.constant 0 : index
    %c0_57 = arith.constant 0 : index
    %51 = vector.load %arg4[%c5, %c0_56, %c0_57] : memref<9x32x32xbf16, #tpu.memory_space<vmem>>, vector<1x32x32xbf16>
    %52 = vector.shape_cast %51 : vector<1x32x32xbf16> to vector<32x32xbf16>
    %cst_58 = arith.constant dense<0.000000e+00> : vector<128x32xf32>
    %53 = tpu.matmul %50, %52, %cst_58 {dimension_numbers = #tpu.dot_dimension_numbers<[1], [0], [0], [1], [0, 0, 1, 1], [], []>} : vector<128x32xbf16>, vector<32x32xbf16>, vector<128x32xf32> -> vector<128x32xf32>
    %54 = arith.addf %47, %53 : vector<128x32xf32>
    %c0_59 = arith.constant 0 : index
    %c2_60 = arith.constant 2 : index
    %c0_61 = arith.constant 0 : index
    %c0_62 = arith.constant 0 : index
    %55 = vector.load %arg14[%c0_59, %c2_60, %c0_61, %c0_62] : memref<2x10x10x32xf32, #tpu.memory_space<vmem>>, vector<2x8x8x32xf32>
    %56 = vector.shape_cast %55 : vector<2x8x8x32xf32> to vector<128x32xf32>
    %57 = arith.truncf %56 : vector<128x32xf32> to vector<128x32xbf16>
    %c6 = arith.constant 6 : index
    %c0_63 = arith.constant 0 : index
    %c0_64 = arith.constant 0 : index
    %58 = vector.load %arg4[%c6, %c0_63, %c0_64] : memref<9x32x32xbf16, #tpu.memory_space<vmem>>, vector<1x32x32xbf16>
    %59 = vector.shape_cast %58 : vector<1x32x32xbf16> to vector<32x32xbf16>
    %cst_65 = arith.constant dense<0.000000e+00> : vector<128x32xf32>
    %60 = tpu.matmul %57, %59, %cst_65 {dimension_numbers = #tpu.dot_dimension_numbers<[1], [0], [0], [1], [0, 0, 1, 1], [], []>} : vector<128x32xbf16>, vector<32x32xbf16>, vector<128x32xf32> -> vector<128x32xf32>
    %61 = arith.addf %54, %60 : vector<128x32xf32>
    %c0_66 = arith.constant 0 : index
    %c2_67 = arith.constant 2 : index
    %c1_68 = arith.constant 1 : index
    %c0_69 = arith.constant 0 : index
    %62 = vector.load %arg14[%c0_66, %c2_67, %c1_68, %c0_69] : memref<2x10x10x32xf32, #tpu.memory_space<vmem>>, vector<2x8x8x32xf32>
    %63 = vector.shape_cast %62 : vector<2x8x8x32xf32> to vector<128x32xf32>
    %64 = arith.truncf %63 : vector<128x32xf32> to vector<128x32xbf16>
    %c7 = arith.constant 7 : index
    %c0_70 = arith.constant 0 : index
    %c0_71 = arith.constant 0 : index
    %65 = vector.load %arg4[%c7, %c0_70, %c0_71] : memref<9x32x32xbf16, #tpu.memory_space<vmem>>, vector<1x32x32xbf16>
    %66 = vector.shape_cast %65 : vector<1x32x32xbf16> to vector<32x32xbf16>
    %cst_72 = arith.constant dense<0.000000e+00> : vector<128x32xf32>
    %67 = tpu.matmul %64, %66, %cst_72 {dimension_numbers = #tpu.dot_dimension_numbers<[1], [0], [0], [1], [0, 0, 1, 1], [], []>} : vector<128x32xbf16>, vector<32x32xbf16>, vector<128x32xf32> -> vector<128x32xf32>
    %68 = arith.addf %61, %67 : vector<128x32xf32>
    %c0_73 = arith.constant 0 : index
    %c2_74 = arith.constant 2 : index
    %c2_75 = arith.constant 2 : index
    %c0_76 = arith.constant 0 : index
    %69 = vector.load %arg14[%c0_73, %c2_74, %c2_75, %c0_76] : memref<2x10x10x32xf32, #tpu.memory_space<vmem>>, vector<2x8x8x32xf32>
    %70 = vector.shape_cast %69 : vector<2x8x8x32xf32> to vector<128x32xf32>
    %71 = arith.truncf %70 : vector<128x32xf32> to vector<128x32xbf16>
    %c8 = arith.constant 8 : index
    %c0_77 = arith.constant 0 : index
    %c0_78 = arith.constant 0 : index
    %72 = vector.load %arg4[%c8, %c0_77, %c0_78] : memref<9x32x32xbf16, #tpu.memory_space<vmem>>, vector<1x32x32xbf16>
    %73 = vector.shape_cast %72 : vector<1x32x32xbf16> to vector<32x32xbf16>
    %cst_79 = arith.constant dense<0.000000e+00> : vector<128x32xf32>
    %74 = tpu.matmul %71, %73, %cst_79 {dimension_numbers = #tpu.dot_dimension_numbers<[1], [0], [0], [1], [0, 0, 1, 1], [], []>} : vector<128x32xbf16>, vector<32x32xbf16>, vector<128x32xf32> -> vector<128x32xf32>
    %75 = arith.addf %68, %74 : vector<128x32xf32>
    %c0_80 = arith.constant 0 : index
    %c0_81 = arith.constant 0 : index
    %76 = vector.load %arg5[%c0_80, %c0_81] : memref<1x32xf32, #tpu.memory_space<vmem>>, vector<1x32xf32>
    %77 = vector.broadcast %76 : vector<1x32xf32> to vector<128x32xf32>
    %78 = arith.addf %75, %77 : vector<128x32xf32>
    %c0_82 = arith.constant 0 : index
    %c0_83 = arith.constant 0 : index
    %79 = vector.load %arg10[%c0_82, %c0_83] : memref<2x128xf32, #tpu.memory_space<vmem>>, vector<2x128xf32>
    %cst_84 = arith.constant dense<0.000000e+00> : vector<2x32xf32>
    %80 = tpu.matmul %79, %78, %cst_84 {dimension_numbers = #tpu.dot_dimension_numbers<[1], [0], [0], [1], [0, 0, 1, 1], [], []>} : vector<2x128xf32>, vector<128x32xf32>, vector<2x32xf32> -> vector<2x32xf32>
    %81 = arith.truncf %80 : vector<2x32xf32> to vector<2x32xbf16>
    %c0_85 = arith.constant 0 : index
    %c0_86 = arith.constant 0 : index
    %82 = vector.load %arg6[%c0_85, %c0_86] : memref<32x8xbf16, #tpu.memory_space<vmem>>, vector<32x8xbf16>
    %cst_87 = arith.constant dense<0.000000e+00> : vector<2x8xf32>
    %83 = tpu.matmul %81, %82, %cst_87 {dimension_numbers = #tpu.dot_dimension_numbers<[1], [0], [0], [1], [0, 0, 1, 1], [], []>} : vector<2x32xbf16>, vector<32x8xbf16>, vector<2x8xf32> -> vector<2x8xf32>
    %c0_88 = arith.constant 0 : index
    %c0_89 = arith.constant 0 : index
    %84 = vector.load %arg7[%c0_88, %c0_89] : memref<1x8xf32, #tpu.memory_space<vmem>>, vector<1x8xf32>
    %85 = vector.broadcast %84 : vector<1x8xf32> to vector<2x8xf32>
    %86 = arith.addf %83, %85 : vector<2x8xf32>
    %cst_90 = arith.constant 0.000000e+00 : f32
    %87 = vector.broadcast %cst_90 : f32 to vector<2x8xf32>
    %88 = arith.maximumf %86, %87 : vector<2x8xf32>
    %89 = arith.truncf %88 : vector<2x8xf32> to vector<2x8xbf16>
    %c0_91 = arith.constant 0 : index
    %c0_92 = arith.constant 0 : index
    %90 = vector.load %arg8[%c0_91, %c0_92] : memref<8x32xbf16, #tpu.memory_space<vmem>>, vector<8x32xbf16>
    %cst_93 = arith.constant dense<0.000000e+00> : vector<2x32xf32>
    %91 = tpu.matmul %89, %90, %cst_93 {dimension_numbers = #tpu.dot_dimension_numbers<[1], [0], [0], [1], [0, 0, 1, 1], [], []>} : vector<2x8xbf16>, vector<8x32xbf16>, vector<2x32xf32> -> vector<2x32xf32>
    %c0_94 = arith.constant 0 : index
    %c0_95 = arith.constant 0 : index
    %92 = vector.load %arg9[%c0_94, %c0_95] : memref<1x32xf32, #tpu.memory_space<vmem>>, vector<1x32xf32>
    %93 = vector.broadcast %92 : vector<1x32xf32> to vector<2x32xf32>
    %94 = arith.addf %91, %93 : vector<2x32xf32>
    %cst_96 = arith.constant 0.000000e+00 : f32
    %95 = vector.broadcast %cst_96 : f32 to vector<2x32xf32>
    %96 = arith.subf %95, %94 : vector<2x32xf32>
    %97 = math.exp %96 : vector<2x32xf32>
    %cst_97 = arith.constant 1.000000e+00 : f32
    %98 = vector.broadcast %cst_97 : f32 to vector<2x32xf32>
    %99 = arith.addf %98, %97 : vector<2x32xf32>
    %100 = tpu.reciprocal %99 {approx = true} : vector<2x32xf32> -> vector<2x32xf32>
    %c0_98 = arith.constant 0 : index
    %c0_99 = arith.constant 0 : index
    %101 = vector.load %arg1[%c0_98, %c0_99] : memref<128x16xbf16, #tpu.memory_space<vmem>>, vector<128x16xbf16>
    %c0_100 = arith.constant 0 : index
    %c0_101 = arith.constant 0 : index
    %102 = vector.load %arg11[%c0_100, %c0_101] : memref<16x32xbf16, #tpu.memory_space<vmem>>, vector<16x32xbf16>
    %cst_102 = arith.constant dense<0.000000e+00> : vector<128x32xf32>
    %103 = tpu.matmul %101, %102, %cst_102 {dimension_numbers = #tpu.dot_dimension_numbers<[1], [0], [0], [1], [0, 0, 1, 1], [], []>} : vector<128x16xbf16>, vector<16x32xbf16>, vector<128x32xf32> -> vector<128x32xf32>
    %c0_103 = arith.constant 0 : index
    %c0_104 = arith.constant 0 : index
    %104 = vector.load %arg12[%c0_103, %c0_104] : memref<1x32xf32, #tpu.memory_space<vmem>>, vector<1x32xf32>
    %105 = vector.broadcast %104 : vector<1x32xf32> to vector<128x32xf32>
    %106 = arith.addf %103, %105 : vector<128x32xf32>
    %107 = vector.shape_cast %78 : vector<128x32xf32> to vector<2x64x32xf32>
    %108 = vector.shape_cast %100 : vector<2x32xf32> to vector<2x1x32xf32>
    %109 = vector.broadcast %108 : vector<2x1x32xf32> to vector<2x64x32xf32>
    %110 = arith.mulf %107, %109 : vector<2x64x32xf32>
    %111 = vector.shape_cast %106 : vector<128x32xf32> to vector<2x64x32xf32>
    %112 = arith.addf %110, %111 : vector<2x64x32xf32>
    %cst_105 = arith.constant 0.000000e+00 : f32
    %113 = vector.broadcast %cst_105 : f32 to vector<2x64x32xf32>
    %114 = arith.maximumf %112, %113 : vector<2x64x32xf32>
    %115 = vector.shape_cast %114 : vector<2x64x32xf32> to vector<2x8x8x32xf32>
    %c0_106 = arith.constant 0 : index
    %c0_107 = arith.constant 0 : index
    %c0_108 = arith.constant 0 : index
    %c0_109 = arith.constant 0 : index
    %116 = vector.load %arg13[%c0_106, %c0_107, %c0_108, %c0_109] : memref<2x8x8x32xf32, #tpu.memory_space<vmem>>, vector<2x8x8x32xf32>
    tpu.vector_store %arg13[%c0_106, %c0_107, %c0_108, %c0_109], %115 {strides = array<i32>} : memref<2x8x8x32xf32, #tpu.memory_space<vmem>>, vector<2x8x8x32xf32>,
    return
  }
}

</mosaic_0001>

<bundles_post_ra>
// kernel: cifar_se_basic_block.1
= control target key start
LH: loop header
LB: loop body
LE: loop exit
PB: predicated region body
PF: predicated region fallthrough
CT: control target
= control target key end

     0   :  { %v3157_v1 = vmov 0   ;;  %vm213_vm0 = vcmask 130048   ;;  %s4207_s0 = inlined_call_operand.vmem [shape: bf16[128,144], index: 0, kind: input, shape index: {}]   ;;  %s4208_s1 = inlined_call_operand.vmem [shape: bf16[128,16], index: 1, kind: input, shape index: {}]   ;;  %s4209_s2 = inlined_call_operand.vmem [shape: bf16[144,32], index: 2, kind: input, shape index: {}]   ;;  %s4210_s3 = inlined_call_operand.vmem [shape: f32[1,32], index: 3, kind: input, shape index: {}]   ;;  %s4211_s4 = inlined_call_operand.vmem [shape: bf16[9,32,32], index: 4, kind: input, shape index: {}]   ;;  %s4212_s5 = inlined_call_operand.vmem [shape: f32[1,32], index: 5, kind: input, shape index: {}]   ;;  %s4213_s6 = inlined_call_operand.vmem [shape: bf16[32,8], index: 6, kind: input, shape index: {}]   ;;  %s4214_s7 = inlined_call_operand.vmem [shape: f32[1,8], index: 7, kind: input, shape index: {}]   ;;  %s4215_s8 = inlined_call_operand.vmem [shape: bf16[8,32], index: 8, kind: input, shape index: {}]   ;;  %s4216_s9 = inlined_call_operand.vmem [shape: f32[1,32], index: 9, kind: input, shape index: {}]   ;;  %s4217_s10 = inlined_call_operand.vmem [shape: f32[2,128], index: 10, kind: input, shape index: {}]   ;;  %s4218_s11 = inlined_call_operand.vmem [shape: bf16[16,32], index: 11, kind: input, shape index: {}]   ;;  %s4219_s12 = inlined_call_operand.vmem [shape: f32[1,32], index: 12, kind: input, shape index: {}]   ;;  %s4220_s13 = inlined_call_operand.hbm [shape: f32[2,8,8,32], index: 13, kind: output, shape index: {}]  }
   0x1   :  { %v3069_v0 = vld [vmem:[%s4209_s2 + $0x38] sm:$0xff]   ;;  %238 = vmatprep.subr.bf16.mxu0 %v3157_v1  ;;  %v3070_v2 = vld [vmem:[%s4209_s2 + $0x30] sm:$0xff]   ;;  %v3071_v3 = vld [vmem:[%s4209_s2 + $0x28] sm:$0xff]  }
   0x2   :  { %239 = vmatpush1.bf16.msra.mxu0 %v3069_v0  ;;  %v3072_v4 = vld [vmem:[%s4209_s2 + $0x20] sm:$0xff]   ;;  %v3073_v6 = vld [vmem:[%s4209_s2 + $0x18] sm:$0xff]   ;;  %v3074_v7 = vld [vmem:[%s4209_s2 + $0x10] sm:$0xff]  }
   0x3   :  { %240 = vmatprep.subr.bf16.mxu0 %v3157_v1  ;;  %v3080_v5 = vld [vmem:[%s4207_s0 + $0x4] ss:$8 sps:$4 sm:$0xff]   ;;  %v3078_v11 = vld [vmem:[%s4207_s0] ss:$8 sps:$4 sm:$0xff]   ;;  %v3081_v12 = vld [vmem:[%s4207_s0 + $0x14] ss:$8 sps:$4 sm:$0xff]  }
   0x4   :  { %2535 = vmatprep.mubr.msk.bf16.mxu0 %vm213_vm0, %v3080_v5  ;;  %v3075_v8 = vld [vmem:[%s4209_s2 + $0x8] sm:$0xff]   ;;  %v3076_v9 = vld [vmem:[%s4209_s2] sm:$0xff]  }
   0x5   :  { %v3077_v10 = vld [vmem:[%s4209_s2 + $0x40] sm:$0xff]  }
   0x6   :  { %241 = vmatpush1.bf16.msra.mxu0 %v3070_v2 }
   0x7   :  { %242 = vmatprep.subr.bf16.mxu0 %v3157_v1 }
   0xa   :  { %243 = vmatpush1.bf16.msra.mxu0 %v3071_v3 }
   0xb   :  { %244 = vmatprep.subr.bf16.mxu0 %v3157_v1 }
   0xe   :  { %245 = vmatpush1.bf16.msra.mxu0 %v3072_v4 }
   0xf   :  { %246 = vmatprep.subr.bf16.mxu0 %v3157_v1 }
  0x12   :  { %247 = vmatpush1.bf16.msra.mxu0 %v3073_v6 }
  0x13   :  { %248 = vmatprep.subr.bf16.mxu0 %v3157_v1 }
  0x16   :  { %249 = vmatpush1.bf16.msra.mxu0 %v3074_v7 }
  0x17   :  { %250 = vmatprep.subr.bf16.mxu0 %v3157_v1 }
  0x1a   :  { %251 = vmatpush1.bf16.msra.mxu0 %v3075_v8 }
  0x1b   :  { %252 = vmatprep.subr.bf16.mxu0 %v3157_v1 }
  0x1e   :  { %253 = vmatpush1.bf16.msra.mxu0 %v3076_v9 }
  0x1f   :  { %268 = vmatprep.subr.bf16.mxu0 %v3157_v1 }
  0x22   :  { %269 = vmatpush2.bf16.msra.mxu0 %v3077_v10 }
  0x25   :  { %271 = vmatmul.mubr.bf16.vlgmr.msra.gmra.mxu0 %v3078_v11 }
  0x26   :  { %2536 = vmatprep.mubr.msk.bf16.mxu0 %vm213_vm0, %v3081_v12 }
  0x27   :  { %18 = vsyncpa [#allocation4], 0  ;;  %v3083_v13 = vld [vmem:[%s4207_s0 + $0x10] ss:$8 sps:$4 sm:$0xff]   ;;  %v3084_v14 = vld [vmem:[%s4207_s0 + $0x24] ss:$8 sps:$4 sm:$0xff]  }
  0x28   :  { %v3086_v15 = vld [vmem:[%s4207_s0 + $0x20] ss:$8 sps:$4 sm:$0xff]   ;;  %v3087_v16 = vld [vmem:[%s4207_s0 + $0x34] ss:$8 sps:$4 sm:$0xff]   ;;  %v3089_v17 = vld [vmem:[%s4207_s0 + $0x30] ss:$8 sps:$4 sm:$0xff]  }
  0x29   :  { %v3090_v18 = vld [vmem:[%s4207_s0 + $0x44] ss:$8 sps:$4 sm:$0xff]   ;;  %v3092_v19 = vld [vmem:[%s4207_s0 + $0x40] ss:$8 sps:$4 sm:$0xff]   ;;  %v3093_v20 = vld [vmem:[%s4207_s0 + $0x54] ss:$8 sps:$4 sm:$0xff]  }
  0x2a   :  { %v3095_v21 = vld [vmem:[%s4207_s0 + $0x50] ss:$8 sps:$4 sm:$0xff]   ;;  %v3096_v22 = vld [vmem:[%s4207_s0 + $0x64] ss:$8 sps:$4 sm:$0xff]   ;;  %v3098_v23 = vld [vmem:[%s4207_s0 + $0x60] ss:$8 sps:$4 sm:$0xff]  }
  0x2b   :  { %v3099_v24 = vld [vmem:[%s4207_s0 + $0x74] ss:$8 sps:$4 sm:$0xff]   ;;  %v3101_v25 = vld [vmem:[%s4207_s0 + $0x70] ss:$8 sps:$4 sm:$0xff]   ;;  %vm351_vm1 = vcmask 261120   ;;  %vm353_vm2 = vcmask 254976  }
  0x2c   :  { %v4221_v26 = vmov 0.0   ;;  %v3102_v27 = vld [vmem:[%s4211_s4 + $0x18] sm:$0xff]   ;;  %v3103_v28 = vld [vmem:[%s4211_s4 + $0x10] sm:$0xff]   ;;  %v3107_v32 = vld [vmem:[%s4211_s4 + $0x8] sm:$0xff]   ;;  %vm3159_vm3 = vmmov 0   ;;  %vm2155_vm4 = vcmask 1043456  }
  0x2d   :  { %279 = vmatmul.mubr.bf16.gmra.mxu0 %v3083_v13  ;;  %355 = vst.msk [vmem:[#allocation2 + $0x10] sm:$0xff] %vm351_vm1, %v4221_v26  ;;  %352 = vst.msk [vmem:[#allocation2] sm:$0xff] %vm351_vm1, %v4221_v26  ;;  %2811 = vmatprep.subr.bf16.mxu1 %v3102_v27  ;;  %v3406_v29 = vld [vmem:[%s4211_s4 + $0x38] sm:$0xff]   ;;  %v3413_v30 = vld [vmem:[%s4211_s4 + $0x30] sm:$0xff]   ;;  %vm2151_vm5 = vcmask 64512  }
  0x2e   :  { %2537 = vmatprep.mubr.msk.bf16.mxu0 %vm213_vm0, %v3084_v14  ;;  %356 = vst.msk [vmem:[#allocation2 + $0x18] sm:$0x3] %vm353_vm2, %v4221_v26  ;;  %354 = vst.msk [vmem:[#allocation2 + $0x8] sm:$0x3] %vm353_vm2, %v4221_v26  ;;  %2812 = vmatpush3.bf16.msra.mxu1 %v3102_v27  ;;  %v3420_v31 = vld [vmem:[%s4211_s4 + $0x58] sm:$0xff]   ;;  %v3109_v2 = vld [vmem:[%s4211_s4] sm:$0xff]  }
  0x2f   :  { %357 = vst.msk [vmem:[#allocation2 + $0x20] sm:$0xff] %vm351_vm1, %v4221_v26  ;;  %359 = vst.msk [vmem:[#allocation2 + $0x30] sm:$0xff] %vm351_vm1, %v4221_v26  ;;  %2813 = vmatprep.subr.bf16.mxu1 %v3103_v28  ;;  %2871 = vmatprep.subr.bf16.mxu0 %v3406_v29  ;;  %v3429_v33 = vld [vmem:[%s4210_s3] ss:$0 sm:$0xff]  ;;  %v3108_v11 = vld [vmem:[%s4211_s4 + $0x50] sm:$0xff]  }
  0x30   :  { %358 = vst.msk [vmem:[#allocation2 + $0x28] sm:$0x3] %vm353_vm2, %v4221_v26  ;;  %360 = vst.msk [vmem:[#allocation2 + $0x38] sm:$0x3] %vm353_vm2, %v4221_v26  ;;  %2872 = vmatpush3.bf16.msra.mxu0 %v3406_v29  ;;  %v3484_v12 = vld [vmem:[%s4211_s4 + $0x28] sm:$0xff]  }
  0x31   :  { %361 = vst.msk [vmem:[#allocation2 + $0x40] sm:$0xff] %vm351_vm1, %v4221_v26  ;;  %363 = vst.msk [vmem:[#allocation2 + $0x50] sm:$0xff] %vm351_vm1, %v4221_v26  ;;  %2873 = vmatprep.subr.bf16.mxu0 %v3413_v30 }
  0x32   :  { %362 = vst.msk [vmem:[#allocation2 + $0x48] sm:$0x3] %vm353_vm2, %v4221_v26  ;;  %364 = vst.msk [vmem:[#allocation2 + $0x58] sm:$0x3] %vm353_vm2, %v4221_v26  ;;  %2814 = vmatpush3.bf16.msra.mxu1 %v3103_v28 }
  0x33   :  { %365 = vst.msk [vmem:[#allocation2 + $0x60] sm:$0xff] %vm351_vm1, %v4221_v26  ;;  %367 = vst.msk [vmem:[#allocation2 + $0x70] sm:$0xff] %vm351_vm1, %v4221_v26  ;;  %2831 = vmatprep.subr.bf16.mxu1 %v3107_v32 }
  0x34   :  { %366 = vst.msk [vmem:[#allocation2 + $0x68] sm:$0x3] %vm353_vm2, %v4221_v26  ;;  %368 = vst.msk [vmem:[#allocation2 + $0x78] sm:$0x3] %vm353_vm2, %v4221_v26  ;;  %2874 = vmatpush3.bf16.msra.mxu0 %v3413_v30 }
  0x35   :  { %287 = vmatmul.mubr.bf16.gmra.mxu0 %v3086_v15  ;;  %369 = vst.msk [vmem:[#allocation2 + $0x80] sm:$0xff] %vm351_vm1, %v4221_v26  ;;  %371 = vst.msk [vmem:[#allocation2 + $0x90] sm:$0xff] %vm351_vm1, %v4221_v26  ;;  %2911 = vmatprep.subr.bf16.mxu0 %v3420_v31  ;;  %v438_v45 = vld [vmem:[#allocation2 + $0x1] sm:$0xff] }
  0x36   :  { %2538 = vmatprep.mubr.msk.bf16.mxu0 %vm213_vm0, %v3087_v16  ;;  %370 = vst.msk [vmem:[#allocation2 + $0x88] sm:$0x3] %vm353_vm2, %v4221_v26  ;;  %372 = vst.msk [vmem:[#allocation2 + $0x98] sm:$0x3] %vm353_vm2, %v4221_v26 }
  0x37   :  { %373 = vst.msk [vmem:[#allocation2 + $0xa0] sm:$0xff] %vm351_vm1, %v4221_v26  ;;  %375 = vst.msk [vmem:[#allocation2 + $0xb0] sm:$0xff] %vm351_vm1, %v4221_v26 }
  0x38   :  { %374 = vst.msk [vmem:[#allocation2 + $0xa8] sm:$0x3] %vm353_vm2, %v4221_v26  ;;  %376 = vst.msk [vmem:[#allocation2 + $0xb8] sm:$0x3] %vm353_vm2, %v4221_v26 }
  0x39   :  { %377 = vst.msk [vmem:[#allocation2 + $0xc0] sm:$0xff] %vm351_vm1, %v4221_v26  ;;  %379 = vst.msk [vmem:[#allocation2 + $0xd0] sm:$0xff] %vm351_vm1, %v4221_v26 }
  0x3a   :  { %378 = vst.msk [vmem:[#allocation2 + $0xc8] sm:$0x3] %vm353_vm2, %v4221_v26  ;;  %380 = vst.msk [vmem:[#allocation2 + $0xd8] sm:$0x3] %vm353_vm2, %v4221_v26 }
  0x3b   :  { %381 = vst.msk [vmem:[#allocation2 + $0xe0] sm:$0xff] %vm351_vm1, %v4221_v26  ;;  %383 = vst.msk [vmem:[#allocation2 + $0xf0] sm:$0xff] %vm351_vm1, %v4221_v26 }
  0x3c   :  { %382 = vst.msk [vmem:[#allocation2 + $0xe8] sm:$0x3] %vm353_vm2, %v4221_v26  ;;  %384 = vst.msk [vmem:[#allocation2 + $0xf8] sm:$0x3] %vm353_vm2, %v4221_v26 }
  0x3d   :  { %295 = vmatmul.mubr.bf16.gmra.mxu0 %v3089_v17  ;;  %385 = vst.msk [vmem:[#allocation2 + $0x100] sm:$0xff] %vm351_vm1, %v4221_v26  ;;  %387 = vst.msk [vmem:[#allocation2 + $0x110] sm:$0xff] %vm351_vm1, %v4221_v26 }
  0x3e   :  { %2539 = vmatprep.mubr.msk.bf16.mxu0 %vm213_vm0, %v3090_v18  ;;  %386 = vst.msk [vmem:[#allocation2 + $0x108] sm:$0x3] %vm353_vm2, %v4221_v26  ;;  %388 = vst.msk [vmem:[#allocation2 + $0x118] sm:$0x3] %vm353_vm2, %v4221_v26 }
  0x3f   :  { %389 = vst.msk [vmem:[#allocation2 + $0x120] sm:$0xff] %vm351_vm1, %v4221_v26  ;;  %391 = vst.msk [vmem:[#allocation2 + $0x130] sm:$0xff] %vm351_vm1, %v4221_v26 }
  0x40   :  { %390 = vst.msk [vmem:[#allocation2 + $0x128] sm:$0x3] %vm353_vm2, %v4221_v26  ;;  %392 = vst.msk [vmem:[#allocation2 + $0x138] sm:$0x3] %vm353_vm2, %v4221_v26 }
  0x45   :  { %303 = vmatmul.mubr.bf16.gmra.mxu0 %v3092_v19 }
  0x46   :  { %2540 = vmatprep.mubr.msk.bf16.mxu0 %vm213_vm0, %v3093_v20  ;;  %v3501_v20 = vld [vmem:[%s4211_s4 + $0x78] sm:$0xff]  }
  0x4d   :  { %311 = vmatmul.mubr.bf16.gmra.mxu0 %v3095_v21 }
  0x4e   :  { %2541 = vmatprep.mubr.msk.bf16.mxu0 %vm213_vm0, %v3096_v22 }
  0x55   :  { %319 = vmatmul.mubr.bf16.gmra.mxu0 %v3098_v23 }
  0x56   :  { %2542 = vmatprep.mubr.msk.bf16.mxu0 %vm213_vm0, %v3099_v24 }
  0x5d   :  { %327 = vmatmul.mubr.bf16.gmra.mxu0 %v3101_v25 }
  0xe5   :  { %v272_v34 = vpop.f32.mrf.mxu0 }
  0xe6   :  { %v273_v35 = vadd.f32 %v3429_v33, %v272_v34 }
  0xe7   :  { %v274_v36 = vpop.f32.mrf.mxu0 }
  0xe8   :  { %v335_v37 = vmax.f32 %v273_v35, 0.0 }
  0xe9   :  { %v275_v38 = vpop.f32.mrf.mxu0 }
  0xea   :  { %394 = vst.msk [vmem:[#allocation2 + $0x11] sm:$0xff] %vm351_vm1, %v335_v37  ;;  %v276_v39 = vadd.f32 %v3429_v33, %v275_v38 }
  0xeb   :  { %v277_v40 = vpop.f32.mrf.mxu0 }
  0xec   :  { %v336_v41 = vmax.f32 %v276_v39, 0.0 }
  0xed   :  { %v280_v42 = vpop.f32.mrf.mxu0 }
  0xee   :  { %395 = vst.msk [vmem:[#allocation2 + $0x21] sm:$0xff] %vm351_vm1, %v336_v41  ;;  %v281_v43 = vadd.f32 %v3429_v33, %v280_v42 }
  0xef   :  { %v282_v44 = vpop.f32.mrf.mxu0 }
  0xf0   :  { %v337_v46 = vmax.f32 %v281_v43, 0.0 }
  0xf1   :  { %v283_v47 = vpop.f32.mrf.mxu0  ;;  %v3436_v48 = vld [vmem:[#allocation2 + $0x11] sm:$0xff] }
  0xf2   :  { %396 = vst.msk [vmem:[#allocation2 + $0x31] sm:$0xff] %vm351_vm1, %v337_v46  ;;  %v284_v49 = vadd.f32 %v3429_v33, %v283_v47  ;;  %v454_v50 = vpack.c.bf16 %v3436_v48, %v438_v45  ;;  %v3442_v54 = vld [vmem:[#allocation2 + $0x10] sm:$0xff] }
  0xf3   :  { %v285_v51 = vpop.f32.mrf.mxu0 }
  0xf4   :  { %v338_v52 = vmax.f32 %v284_v49, 0.0  ;;  %2815 = vmatprep.mubr.msk.bf16.mxu1 %vm351_vm1, %v454_v50  ;;  %v3542_v50 = vld [vmem:[#allocation2 + $0x12] sm:$0xff] }
  0xf5   :  { %v288_v53 = vpop.f32.mrf.mxu0  ;;  %v3444_v55 = vld [vmem:[#allocation2 + $0x20] sm:$0xff] }
  0xf6   :  { %v3446_v56 = vld [vmem:[#allocation2 + $0x21] sm:$0xff]  ;;  %397 = vst.msk [vmem:[#allocation2 + $0x41] sm:$0xff] %vm351_vm1, %v338_v52  ;;  %v289_v57 = vadd.f32 %v3429_v33, %v288_v53  ;;  %v927_v58 = vpack.c.bf16 %v3444_v55, %v3442_v54 }
  0xf7   :  { %v1105_v59 = vpack.c.bf16 %v3446_v56, %v3436_v48  ;;  %v290_v60 = vpop.f32.mrf.mxu0  ;;  %v3530_v42 = vld [vmem:[#allocation2 + $0x22] sm:$0xff] }
  0xf8   :  { %v339_v61 = vmax.f32 %v289_v57, 0.0  ;;  %2875 = vmatprep.mubr.msk.bf16.mxu0 %vm351_vm1, %v927_v58  ;;  %v1283_v52 = vpack.c.bf16 %v3530_v42, %v3542_v50  ;;  %v446_v53 = vld [vmem:[#allocation2 + $0xa1] sm:$0xff] }
  0xf9   :  { %v291_v62 = vpop.f32.mrf.mxu0  ;;  %v3455_v63 = vld [vmem:[#allocation2 + $0x31] sm:$0xff]  ;;  %v3118_v48 = vld [vmem:[%s4211_s4 + $0x88] sm:$0xff]  }
  0xfa   :  { %398 = vst.msk [vmem:[#allocation2 + $0x51] sm:$0xff] %vm351_vm1, %v339_v61  ;;  %v292_v0 = vadd.f32 %v3429_v33, %v291_v62  ;;  %v3461_v1 = vpack.c.bf16 %v3455_v63, %v3446_v56  ;;  %v3468_v6 = vld [vmem:[#allocation2 + $0x30] sm:$0xff]  ;;  %v3119_v56 = vld [vmem:[%s4211_s4 + $0x80] sm:$0xff]  }
  0xfb   :  { %v293_v3 = vpop.f32.mrf.mxu0 }
  0xfc   :  { %v340_v4 = vmax.f32 %v292_v0, 0.0  ;;  %2816 = vmatmul.mubr.msk.bf16.vlgmr.msra.gmra.mxu1 %vm351_vm1, %v3461_v1 }
  0xfd   :  { %v296_v5 = vpop.f32.mrf.mxu0  ;;  %v3470_v7 = vld [vmem:[#allocation2 + $0x40] sm:$0xff]  ;;  %2832 = vmatpush3.bf16.msra.mxu1 %v3107_v32 }
  0xfe   :  { %v3472_v8 = vld [vmem:[#allocation2 + $0x41] sm:$0xff]  ;;  %399 = vst.msk [vmem:[#allocation2 + $0x61] sm:$0xff] %vm351_vm1, %v340_v4  ;;  %v297_v9 = vadd.f32 %v3429_v33, %v296_v5  ;;  %v928_v10 = vpack.c.bf16 %v3470_v7, %v3468_v6  ;;  %2833 = vmatprep.subr.bf16.mxu1 %v3109_v2 }
  0xff   :  { %v1106_v13 = vpack.c.bf16 %v3472_v8, %v3455_v63  ;;  %v298_v14 = vpop.f32.mrf.mxu0  ;;  %v3555_v3 = vld [vmem:[#allocation2 + $0x42] sm:$0xff] }
 0x100   :  { %v341_v15 = vmax.f32 %v297_v9, 0.0  ;;  %2876 = vmatmul.mubr.msk.bf16.vlgmr.msra.gmra.mxu0 %vm351_vm1, %v928_v10  ;;  %v3560_v10 = vld [vmem:[#allocation2 + $0x32] sm:$0xff] }
 0x101   :  { %v299_v16 = vpop.f32.mrf.mxu0  ;;  %v3489_v17 = vld [vmem:[#allocation2 + $0x51] sm:$0xff]  ;;  %2912 = vmatpush3.bf16.msra.mxu0 %v3420_v31  ;;  %2834 = vmatpush3.bf16.msra.mxu1 %v3109_v2 }
 0x102   :  { %400 = vst.msk [vmem:[#allocation2 + $0x71] sm:$0xff] %vm351_vm1, %v341_v15  ;;  %v300_v18 = vadd.f32 %v3429_v33, %v299_v16  ;;  %v3496_v19 = vpack.c.bf16 %v3489_v17, %v3472_v8  ;;  %2913 = vmatprep.subr.bf16.mxu0 %v3108_v11  ;;  %2851 = vmatprep.subr.bf16.mxu1 %v3484_v12  ;;  %v3506_v24 = vld [vmem:[#allocation2 + $0x50] sm:$0xff] }
 0x103   :  { %v301_v21 = vpop.f32.mrf.mxu0  ;;  %v1284_v15 = vpack.c.bf16 %v3555_v3, %v3560_v10  ;;  %v3568_v16 = vld [vmem:[#allocation2 + $0x52] sm:$0xff] }
 0x104   :  { %v342_v22 = vmax.f32 %v300_v18, 0.0  ;;  %2819 = vmatprep.mubr.msk.bf16.mxu1 %vm351_vm1, %v3496_v19  ;;  %v3112_v18 = vld [vmem:[%s4211_s4 + $0x70] sm:$0xff]  }
 0x105   :  { %v304_v23 = vpop.f32.mrf.mxu0  ;;  %v3508_v25 = vld [vmem:[#allocation2 + $0x60] sm:$0xff]  ;;  %2914 = vmatpush3.bf16.msra.mxu0 %v3108_v11  ;;  %v1461_v8 = vld [vmem:[#allocation2 + $0x130] sm:$0xff] }
 0x106   :  { %v3510_v27 = vld [vmem:[#allocation2 + $0x61] sm:$0xff]  ;;  %401 = vst.msk [vmem:[#allocation2 + $0x81] sm:$0xff] %vm351_vm1, %v342_v22  ;;  %v305_v28 = vadd.f32 %v3429_v33, %v304_v23  ;;  %v929_v31 = vpack.c.bf16 %v3508_v25, %v3506_v24  ;;  %2951 = vmatprep.subr.bf16.mxu0 %v3501_v20 }
 0x107   :  { %v1107_v32 = vpack.c.bf16 %v3510_v27, %v3489_v17  ;;  %v306_v34 = vpop.f32.mrf.mxu0  ;;  %v3558_v5 = vld [vmem:[#allocation2 + $0x62] sm:$0xff] }
 0x108   :  { %v343_v35 = vmax.f32 %v305_v28, 0.0  ;;  %2879 = vmatprep.mubr.msk.bf16.mxu0 %vm351_vm1, %v929_v31  ;;  %v1285_v23 = vpack.c.bf16 %v3558_v5, %v3568_v16 }
 0x109   :  { %v307_v36 = vpop.f32.mrf.mxu0  ;;  %v3520_v37 = vld [vmem:[#allocation2 + $0x71] sm:$0xff] }
 0x10a   :  { %402 = vst.msk [vmem:[#allocation2 + $0xb1] sm:$0xff] %vm351_vm1, %v343_v35  ;;  %v308_v38 = vadd.f32 %v3429_v33, %v307_v36  ;;  %v3526_v39 = vpack.c.bf16 %v3520_v37, %v3510_v27  ;;  %v3532_v44 = vld [vmem:[#allocation2 + $0x70] sm:$0xff] }
 0x10b   :  { %v309_v40 = vpop.f32.mrf.mxu0 }
 0x10c   :  { %v344_v41 = vmax.f32 %v308_v38, 0.0  ;;  %2820 = vmatmul.mubr.msk.bf16.gmra.mxu1 %vm351_vm1, %v3526_v39 }
 0x10d   :  { %v312_v43 = vpop.f32.mrf.mxu0  ;;  %v3534_v45 = vld [vmem:[#allocation2 + $0x80] sm:$0xff] }
 0x10e   :  { %v3536_v46 = vld [vmem:[#allocation2 + $0x81] sm:$0xff]  ;;  %403 = vst.msk [vmem:[#allocation2 + $0xc1] sm:$0xff] %vm351_vm1, %v344_v41  ;;  %v313_v47 = vadd.f32 %v3429_v33, %v312_v43  ;;  %v930_v49 = vpack.c.bf16 %v3534_v45, %v3532_v44 }
 0x10f   :  { %v314_v51 = vpop.f32.mrf.mxu0  ;;  %v1108_v57 = vpack.c.bf16 %v3536_v46, %v3520_v37  ;;  %v3588_v40 = vld [vmem:[#allocation2 + $0x82] sm:$0xff] }
 0x110   :  { %v345_v58 = vmax.f32 %v313_v47, 0.0  ;;  %2880 = vmatmul.mubr.msk.bf16.gmra.mxu0 %vm351_vm1, %v930_v49 }
 0x111   :  { %v315_v60 = vpop.f32.mrf.mxu0  ;;  %2915 = vmatprep.mubr.msk.bf16.mxu0 %vm351_vm1, %v1283_v52  ;;  %v3550_v61 = vld [vmem:[#allocation2 + $0xb1] sm:$0xff] }
 0x112   :  { %404 = vst.msk [vmem:[#allocation2 + $0xd1] sm:$0xff] %vm351_vm1, %v345_v58  ;;  %v316_v62 = vadd.f32 %v3429_v33, %v315_v60  ;;  %v458_v0 = vpack.c.bf16 %v3550_v61, %v446_v53  ;;  %v3602_v53 = vld [vmem:[#allocation2 + $0xb2] sm:$0xff] }
 0x113   :  { %v317_v2 = vpop.f32.mrf.mxu0 }
 0x114   :  { %v346_v4 = vmax.f32 %v316_v62, 0.0  ;;  %2823 = vmatprep.mubr.msk.bf16.mxu1 %vm351_vm1, %v458_v0 }
 0x115   :  { %v320_v9 = vpop.f32.mrf.mxu0  ;;  %v3562_v11 = vld [vmem:[#allocation2 + $0xc1] sm:$0xff] }
 0x116   :  { %405 = vst.msk [vmem:[#allocation2 + $0xe1] sm:$0xff] %vm351_vm1, %v346_v4  ;;  %v321_v14 = vadd.f32 %v3429_v33, %v320_v9  ;;  %v1109_v21 = vpack.c.bf16 %v3562_v11, %v3550_v61  ;;  %v3592_v43 = vld [vmem:[#allocation2 + $0xc2] sm:$0xff] }
 0x117   :  { %v322_v22 = vpop.f32.mrf.mxu0  ;;  %v1287_v62 = vpack.c.bf16 %v3592_v43, %v3602_v53 }
 0x118   :  { %v347_v28 = vmax.f32 %v321_v14, 0.0  ;;  %2916 = vmatmul.mubr.msk.bf16.vlgmr.msra.gmra.mxu0 %vm351_vm1, %v1284_v15 }
 0x119   :  { %v323_v31 = vpop.f32.mrf.mxu0  ;;  %2919 = vmatprep.mubr.msk.bf16.mxu0 %vm351_vm1, %v1285_v23  ;;  %v3579_v34 = vld [vmem:[#allocation2 + $0xd1] sm:$0xff]  ;;  %2952 = vmatpush3.bf16.msra.mxu0 %v3501_v20 }
 0x11a   :  { %406 = vst.msk [vmem:[#allocation2 + $0xf1] sm:$0xff] %vm351_vm1, %v347_v28  ;;  %v324_v35 = vadd.f32 %v3429_v33, %v323_v31  ;;  %v3586_v36 = vpack.c.bf16 %v3579_v34, %v3562_v11  ;;  %2953 = vmatprep.subr.bf16.mxu0 %v3112_v18  ;;  %v3594_v20 = vld [vmem:[#allocation2 + $0x72] sm:$0xff] }
 0x11b   :  { %v325_v38 = vpop.f32.mrf.mxu0  ;;  %v1286_v52 = vpack.c.bf16 %v3588_v40, %v3594_v20  ;;  %v3620_v23 = vld [vmem:[#allocation2 + $0xd2] sm:$0xff] }
 0x11c   :  { %v348_v41 = vmax.f32 %v324_v35, 0.0  ;;  %2824 = vmatmul.mubr.msk.bf16.gmra.mxu1 %vm351_vm1, %v3586_v36  ;;  %v1817_v11 = vld [vmem:[#allocation2 + $0x132] sm:$0xff] }
 0x11d   :  { %v328_v47 = vpop.f32.mrf.mxu0  ;;  %v3596_v49 = vld [vmem:[#allocation2 + $0xe1] sm:$0xff]  ;;  %2954 = vmatpush3.bf16.msra.mxu0 %v3112_v18 }
 0x11e   :  { %407 = vst.msk [vmem:[#allocation2 + $0x101] sm:$0xff] %vm351_vm1, %v348_v41  ;;  %v329_v51 = vadd.f32 %v3429_v33, %v328_v47  ;;  %v1110_v58 = vpack.c.bf16 %v3596_v49, %v3579_v34  ;;  %2991 = vmatprep.subr.mxu0 %v4221_v26  ;;  %v3617_v18 = vld [vmem:[#allocation2 + $0xe2] sm:$0xff] }
 0x11f   :  { %v330_v60 = vpop.f32.mrf.mxu0  ;;  %v410_v47 = vld [vmem:[#allocation2] sm:$0xff] }
 0x120   :  { %v349_v0 = vmax.f32 %v329_v51, 0.0  ;;  %2920 = vmatmul.mubr.msk.bf16.gmra.mxu0 %vm351_vm1, %v1286_v52  ;;  %v426_v60 = vpack.c.bf16 %v3442_v54, %v410_v47  ;;  %v3659_v54 = vpack.c.bf16 %v3468_v6, %v3444_v55  ;;  %v418_v55 = vld [vmem:[#allocation2 + $0xa0] sm:$0xff]  ;;  %v3679_v6 = vpack.c.bf16 %v3532_v44, %v3508_v25 }
 0x121   :  { %v331_v2 = vpop.f32.mrf.mxu0  ;;  %2923 = vmatprep.mubr.msk.bf16.mxu0 %vm351_vm1, %v1287_v62  ;;  %v3611_v4 = vld [vmem:[#allocation2 + $0xf1] sm:$0xff]  ;;  %v420_v25 = vld [vmem:[#allocation2 + $0xc0] sm:$0xff] }
 0x122   :  { %408 = vst.msk [vmem:[#allocation2 + $0x111] sm:$0xff] %vm351_vm1, %v349_v0  ;;  %v332_v9 = vadd.f32 %v3429_v33, %v331_v2  ;;  %v460_v14 = vpack.c.bf16 %v3611_v4, %v3596_v49  ;;  %v3622_v28 = vld [vmem:[#allocation2 + $0xf2] sm:$0xff]  ;;  %v1288_v33 = vpack.c.bf16 %v3617_v18, %v3620_v23 }
 0x123   :  { %v333_v15 = vpop.f32.mrf.mxu0 }
 0x124   :  { %v350_v22 = vmax.f32 %v332_v9, 0.0  ;;  %2827 = vmatprep.mubr.msk.bf16.mxu1 %vm351_vm1, %v460_v14 }
 0x125   :  { %v3624_v31 = vld [vmem:[#allocation2 + $0x102] sm:$0xff] }
 0x126   :  { %v3626_v35 = vld [vmem:[#allocation2 + $0x101] sm:$0xff]  ;;  %409 = vst.msk [vmem:[#allocation2 + $0x121] sm:$0xff] %vm351_vm1, %v350_v22  ;;  %v1289_v38 = vpack.c.bf16 %v3624_v31, %v3622_v28 }
 0x127   :  { %v1111_v41 = vpack.c.bf16 %v3626_v35, %v3611_v4  ;;  %v3113_v22 = vld [vmem:[%s4211_s4 + $0x20] sm:$0xff]  }
 0x128   :  { %2924 = vmatmul.mubr.msk.bf16.gmra.mxu0 %vm351_vm1, %v1288_v33  ;;  %v3666_v33 = vpack.c.bf16 %v3506_v24, %v3470_v7  ;;  %v1631_v24 = vld [vmem:[#allocation2 + $0x91] sm:$0xff] }
 0x129   :  { %2927 = vmatprep.mubr.msk.bf16.mxu0 %vm351_vm1, %v1289_v38  ;;  %v3637_v51 = vld [vmem:[#allocation2 + $0x111] sm:$0xff]  ;;  %v422_v38 = vld [vmem:[#allocation2 + $0xe0] sm:$0xff] }
 0x12a   :  { %v461_v52 = vpack.c.bf16 %v3637_v51, %v3626_v35  ;;  %v3644_v62 = vld [vmem:[#allocation2 + $0x112] sm:$0xff] }
 0x12c   :  { %2828 = vmatmul.mubr.msk.bf16.gmra.mxu1 %vm351_vm1, %v461_v52 }
 0x12d   :  { %2835 = vmatprep.mubr.msk.bf16.mxu1 %vm351_vm1, %v426_v60  ;;  %v3646_v0 = vld [vmem:[#allocation2 + $0x122] sm:$0xff]  ;;  %v425_v60 = vld [vmem:[#allocation2 + $0x110] sm:$0xff] }
 0x12e   :  { %v3648_v2 = vld [vmem:[#allocation2 + $0x121] sm:$0xff]  ;;  %v1290_v9 = vpack.c.bf16 %v3646_v0, %v3644_v62  ;;  %v1825_v34 = vpack.c.bf16 %v1817_v11, %v3646_v0 }
 0x12f   :  { %v1112_v15 = vpack.c.bf16 %v3648_v2, %v3637_v51 }
 0x130   :  { %2928 = vmatmul.mubr.msk.bf16.gmra.mxu0 %vm351_vm1, %v1290_v9  ;;  %v733_v9 = vld [vmem:[#allocation2 + $0x2] sm:$0xff] }
 0x131   :  { %2955 = vmatprep.mubr.msk.bf16.mxu0 %vm351_vm1, %v3461_v1  ;;  %v419_v1 = vld [vmem:[#allocation2 + $0xb0] sm:$0xff] }
 0x132   :  { %v430_v7 = vpack.c.bf16 %v419_v1, %v418_v55  ;;  %v749_v55 = vpack.c.bf16 %v3542_v50, %v733_v9  ;;  %v3114_v50 = vld [vmem:[%s4211_s4 + $0x48] sm:$0xff]  }
 0x134   :  { %2836 = vmatmul.mubr.msk.bf16.vlgmr.msra.gmra.mxu1 %vm351_vm1, %v3659_v54 }
 0x135   :  { %2839 = vmatprep.mubr.msk.bf16.mxu1 %vm351_vm1, %v3666_v33  ;;  %2852 = vmatpush3.bf16.msra.mxu1 %v3484_v12  ;;  %v1643_v12 = vpack.c.bf16 %v1631_v24, %v3536_v46 }
 0x136   :  { %2853 = vmatprep.subr.bf16.mxu1 %v3113_v22 }
 0x138   :  { %2956 = vmatmul.mubr.msk.bf16.vlgmr.msra.gmra.mxu0 %vm351_vm1, %v3496_v19  ;;  %v421_v19 = vld [vmem:[#allocation2 + $0xd0] sm:$0xff] }
 0x139   :  { %2959 = vmatprep.mubr.msk.bf16.mxu0 %vm351_vm1, %v3526_v39  ;;  %2854 = vmatpush3.bf16.msra.mxu1 %v3113_v22  ;;  %v423_v39 = vld [vmem:[#allocation2 + $0xf0] sm:$0xff]  ;;  %v3689_v44 = vpack.c.bf16 %v421_v19, %v420_v25  ;;  %v424_v22 = vld [vmem:[#allocation2 + $0x100] sm:$0xff] }
 0x13a   :  { %3058 = vmatprep.subr.bf16.mxu1 %v3406_v29  ;;  %v3691_v47 = vpack.c.bf16 %v423_v39, %v422_v38 }
 0x13c   :  { %2840 = vmatmul.mubr.msk.bf16.gmra.mxu1 %vm351_vm1, %v3679_v6 }
 0x13d   :  { %2843 = vmatprep.mubr.msk.bf16.mxu1 %vm351_vm1, %v430_v7  ;;  %v1639_v7 = vld [vmem:[#allocation2 + $0x131] sm:$0xff] }
 0x13e   :  { %v1647_v24 = vpack.c.bf16 %v1639_v7, %v3648_v2 }
 0x140   :  { %2960 = vmatmul.mubr.msk.bf16.gmra.mxu0 %vm351_vm1, %v1643_v12 }
 0x141   :  { %2963 = vmatprep.mubr.msk.bf16.mxu0 %vm351_vm1, %v3586_v36  ;;  %v3699_v36 = vpack.c.bf16 %v425_v60, %v424_v22 }
 0x144   :  { %2844 = vmatmul.mubr.msk.bf16.gmra.mxu1 %vm351_vm1, %v3689_v44 }
 0x145   :  { %2847 = vmatprep.mubr.msk.bf16.mxu1 %vm351_vm1, %v3691_v47 }
 0x148   :  { %2964 = vmatmul.mubr.msk.bf16.gmra.mxu0 %vm351_vm1, %v460_v14  ;;  %v3709_v14 = vpack.c.bf16 %v3560_v10, %v3530_v42  ;;  %v741_v42 = vld [vmem:[#allocation2 + $0xa2] sm:$0xff] }
 0x149   :  { %2967 = vmatprep.mubr.msk.bf16.mxu0 %vm351_vm1, %v461_v52  ;;  %v3713_v52 = vpack.c.bf16 %v3568_v16, %v3555_v3  ;;  %v752_v3 = vpack.c.bf16 %v3594_v20, %v3558_v5  ;;  %v753_v10 = vpack.c.bf16 %v3602_v53, %v741_v42  ;;  %v3734_v16 = vpack.c.bf16 %v3622_v28, %v3617_v18  ;;  %v3116_v18 = vld [vmem:[%s4211_s4 + $0x68] sm:$0xff]  }
 0x14a   :  { %v931_v5 = vpack.c.bf16 %v420_v25, %v419_v1  ;;  %v932_v20 = vpack.c.bf16 %v422_v38, %v421_v19  ;;  %v933_v53 = vpack.c.bf16 %v424_v22, %v423_v39 }
 0x14c   :  { %2848 = vmatmul.mubr.msk.bf16.gmra.mxu1 %vm351_vm1, %v3699_v36 }
 0x14d   :  { %2855 = vmatprep.mubr.msk.bf16.mxu1 %vm351_vm1, %v749_v55 }
 0x150   :  { %2968 = vmatmul.mubr.msk.bf16.gmra.mxu0 %vm351_vm1, %v1647_v24 }
 0x151   :  { %3023 = vmatprep.mubr.msk.f32.mxu0 %vm3159_vm3, %v4221_v26 }
 0x154   :  { %2856 = vmatmul.mubr.msk.bf16.vlgmr.msra.gmra.mxu1 %vm351_vm1, %v3709_v14 }
 0x155   :  { %2859 = vmatprep.mubr.msk.bf16.mxu1 %vm351_vm1, %v3713_v52  ;;  %3060 = vmatpush3.bf16.msra.mxu1 %v3406_v29  ;;  %v754_v29 = vpack.c.bf16 %v3620_v23, %v3592_v43  ;;  %v3115_v43 = vld [vmem:[%s4211_s4 + $0x40] sm:$0xff]  }
 0x156   :  { %3059 = vmatprep.subr.bf16.mxu1 %v3413_v30  ;;  %v926_v23 = vld [vmem:[#allocation2 + $0x120] sm:$0xff] }
 0x157   :  { %v934_v28 = vpack.c.bf16 %v926_v23, %v425_v60 }
 0x159   :  { %3061 = vmatpush3.bf16.msra.mxu1 %v3413_v30  ;;  %v756_v30 = vpack.c.bf16 %v3644_v62, %v3624_v31  ;;  %v3117_v31 = vld [vmem:[%s4211_s4 + $0x60] sm:$0xff]  }
 0x15a   :  { %2891 = vmatprep.subr.bf16.mxu1 %v3114_v50 }
 0x15c   :  { %2860 = vmatmul.mubr.msk.bf16.gmra.mxu1 %vm351_vm1, %v752_v3 }
 0x15d   :  { %2863 = vmatprep.mubr.msk.bf16.mxu1 %vm351_vm1, %v753_v10 }
 0x164   :  { %2864 = vmatmul.mubr.msk.bf16.gmra.mxu1 %vm351_vm1, %v754_v29 }
 0x165   :  { %2867 = vmatprep.mubr.msk.bf16.mxu1 %vm351_vm1, %v3734_v16 }
 0x16c   :  { %2868 = vmatmul.mubr.msk.bf16.gmra.mxu1 %vm351_vm1, %v756_v30 }
 0x16d   :  { %2883 = vmatprep.mubr.msk.bf16.mxu1 %vm351_vm1, %v931_v5 }
 0x174   :  { %2884 = vmatmul.mubr.msk.bf16.vlgmr.msra.gmra.mxu1 %vm351_vm1, %v932_v20 }
 0x175   :  { %2887 = vmatprep.mubr.msk.bf16.mxu1 %vm351_vm1, %v933_v53  ;;  %2892 = vmatpush3.bf16.msra.mxu1 %v3114_v50 }
 0x176   :  { %2893 = vmatprep.subr.bf16.mxu1 %v3115_v43 }
 0x179   :  { %2894 = vmatpush3.bf16.msra.mxu1 %v3115_v43 }
 0x17a   :  { %2931 = vmatprep.subr.bf16.mxu1 %v3116_v18 }
 0x17c   :  { %2888 = vmatmul.mubr.msk.bf16.gmra.mxu1 %vm351_vm1, %v934_v28 }
 0x17d   :  { %2895 = vmatprep.mubr.msk.bf16.mxu1 %vm351_vm1, %v1105_v59  ;;  %v1453_v59 = vld [vmem:[#allocation2 + $0x90] sm:$0xff] }
 0x17e   :  { %v1465_v63 = vpack.c.bf16 %v1453_v59, %v3534_v45 }
 0x184   :  { %2896 = vmatmul.mubr.msk.bf16.vlgmr.msra.gmra.mxu1 %vm351_vm1, %v1106_v13  ;;  %v1469_v13 = vpack.c.bf16 %v1461_v8, %v926_v23 }
 0x185   :  { %2899 = vmatprep.mubr.msk.bf16.mxu1 %vm351_vm1, %v1107_v32  ;;  %2932 = vmatpush3.bf16.msra.mxu1 %v3116_v18  ;;  %v1809_v32 = vld [vmem:[#allocation2 + $0x92] sm:$0xff] }
 0x186   :  { %2933 = vmatprep.subr.bf16.mxu1 %v3117_v31  ;;  %v1821_v45 = vpack.c.bf16 %v1809_v32, %v3588_v40 }
 0x189   :  { %2934 = vmatpush3.bf16.msra.mxu1 %v3117_v31 }
 0x18a   :  { %2971 = vmatprep.subr.bf16.mxu1 %v3118_v48 }
 0x18c   :  { %2900 = vmatmul.mubr.msk.bf16.gmra.mxu1 %vm351_vm1, %v1108_v57 }
 0x18d   :  { %2903 = vmatprep.mubr.msk.bf16.mxu1 %vm351_vm1, %v1109_v21 }
 0x194   :  { %2904 = vmatmul.mubr.msk.bf16.gmra.mxu1 %vm351_vm1, %v1110_v58 }
 0x195   :  { %2907 = vmatprep.mubr.msk.bf16.mxu1 %vm351_vm1, %v1111_v41 }
 0x19c   :  { %2908 = vmatmul.mubr.msk.bf16.gmra.mxu1 %vm351_vm1, %v1112_v15 }
 0x19d   :  { %2935 = vmatprep.mubr.msk.bf16.mxu1 %vm351_vm1, %v3659_v54 }
 0x1a4   :  { %2936 = vmatmul.mubr.msk.bf16.vlgmr.msra.gmra.mxu1 %vm351_vm1, %v3666_v33 }
 0x1a5   :  { %2939 = vmatprep.mubr.msk.bf16.mxu1 %vm351_vm1, %v3679_v6  ;;  %2972 = vmatpush3.bf16.msra.mxu1 %v3118_v48 }
 0x1a6   :  { %2973 = vmatprep.subr.bf16.mxu1 %v3119_v56 }
 0x1a9   :  { %2974 = vmatpush3.bf16.msra.mxu1 %v3119_v56 }
 0x1aa   :  { %3026 = vmatprep.subr.bf16.mxu1 %v4221_v26 }
 0x1ac   :  { %2940 = vmatmul.mubr.msk.bf16.gmra.mxu1 %vm351_vm1, %v1465_v63 }
 0x1ad   :  { %2943 = vmatprep.mubr.msk.bf16.mxu1 %vm351_vm1, %v3689_v44 }
 0x1b4   :  { %2944 = vmatmul.mubr.msk.bf16.gmra.mxu1 %vm351_vm1, %v3691_v47 }
 0x1b5   :  { %2947 = vmatprep.mubr.msk.bf16.mxu1 %vm351_vm1, %v3699_v36 }
 0x1bc   :  { %2948 = vmatmul.mubr.msk.bf16.gmra.mxu1 %vm351_vm1, %v1469_v13  ;;  %v2817_v17 = vpop.f32.mrf.mxu1 }
 0x1bd   :  { %2975 = vmatprep.mubr.msk.bf16.mxu1 %vm351_vm1, %v3709_v14 }
 0x1be   :  { %v537_v27 = vpop.f32.mrf.mxu1 }
 0x1c0   :  { %v2818_v37 = vpop.f32.mrf.mxu1  ;;  %v3822_v7 = vpop.f32.mrf.mxu0 }
 0x1c2   :  { %v540_v46 = vpop.f32.mrf.mxu1  ;;  %v3824_v42 = vpop.f32.mrf.mxu0 }
 0x1c4   :  { %2976 = vmatmul.mubr.msk.bf16.vlgmr.msra.gmra.mxu1 %vm351_vm1, %v3713_v52 }
 0x1c5   :  { %2979 = vmatprep.mubr.msk.bf16.mxu1 %vm351_vm1, %v752_v3 }
 0x1cc   :  { %2980 = vmatmul.mubr.msk.bf16.gmra.mxu1 %vm351_vm1, %v1821_v45  ;;  %v2821_v57 = vpop.f32.mrf.mxu1 }
 0x1cd   :  { %2983 = vmatprep.mubr.msk.bf16.mxu1 %vm351_vm1, %v754_v29 }
 0x1ce   :  { %v553_v61 = vpop.f32.mrf.mxu1 }
 0x1d0   :  { %v2822_v21 = vpop.f32.mrf.mxu1 }
 0x1d2   :  { %v556_v49 = vpop.f32.mrf.mxu1 }
 0x1d4   :  { %2984 = vmatmul.mubr.msk.bf16.gmra.mxu1 %vm351_vm1, %v3734_v16 }
 0x1d5   :  { %2987 = vmatprep.mubr.msk.bf16.mxu1 %vm351_vm1, %v756_v30  ;;  %v3826_v30 = vpop.f32.mrf.mxu0 }
 0x1d7   :  { %v3828_v18 = vpop.f32.mrf.mxu0 }
 0x1d9   :  { %v3830_v31 = vpop.f32.mrf.mxu0 }
 0x1db   :  { %v3834_v8 = vpop.f32.mrf.mxu0 }
 0x1dc   :  { %2988 = vmatmul.mubr.msk.bf16.gmra.mxu1 %vm351_vm1, %v1825_v34  ;;  %v2825_v40 = vpop.f32.mrf.mxu1 }
 0x1dd   :  { %3030 = vmatprep.mubr.msk.bf16.mxu1 %vm3159_vm3, %v4221_v26 }
 0x1de   :  { %v569_v58 = vpop.f32.mrf.mxu1 }
 0x1e0   :  { %v2826_v4 = vpop.f32.mrf.mxu1 }
 0x1e2   :  { %v572_v35 = vpop.f32.mrf.mxu1 }
 0x1ec   :  { %v2829_v41 = vpop.f32.mrf.mxu1 }
 0x1ee   :  { %v585_v51 = vpop.f32.mrf.mxu1 }
 0x1f0   :  { %v2830_v62 = vpop.f32.mrf.mxu1 }
 0x1f2   :  { %v588_v2 = vpop.f32.mrf.mxu1 }
 0x1f4   :  { %v2837_v15 = vpop.f32.mrf.mxu1 }
 0x1f5   :  { %v679_v54 = vadd.f32 %v2837_v15, %v2817_v17 }
 0x1f6   :  { %v670_v33 = vpop.f32.mrf.mxu1 }
 0x1f7   :  { %v671_v1 = vadd.f32 %v670_v33, %v537_v27 }
 0x1f8   :  { %v2838_v6 = vpop.f32.mrf.mxu1 }
 0x1f9   :  { %v682_v12 = vadd.f32 %v2838_v6, %v2818_v37  ;;  %v3840_v37 = vpop.f32.mrf.mxu0 }
 0x1fa   :  { %v673_v19 = vpop.f32.mrf.mxu1 }
 0x1fb   :  { %v674_v39 = vadd.f32 %v673_v19, %v540_v46  ;;  %v3846_v11 = vpop.f32.mrf.mxu0 }
 0x1fc   :  { %v2841_v0 = vpop.f32.mrf.mxu1 }
 0x1fd   :  { %v695_v25 = vadd.f32 %v2841_v0, %v2821_v57 }
 0x1fe   :  { %v686_v44 = vpop.f32.mrf.mxu1 }
 0x1ff   :  { %v687_v38 = vadd.f32 %v686_v44, %v553_v61 }
 0x200   :  { %v2842_v47 = vpop.f32.mrf.mxu1 }
 0x201   :  { %v698_v60 = vadd.f32 %v2842_v47, %v2822_v21 }
 0x202   :  { %v689_v9 = vpop.f32.mrf.mxu1 }
 0x203   :  { %v690_v22 = vadd.f32 %v689_v9, %v556_v49 }
 0x204   :  { %v2845_v36 = vpop.f32.mrf.mxu1 }
 0x205   :  { %v711_v55 = vadd.f32 %v2845_v36, %v2825_v40 }
 0x206   :  { %v702_v24 = vpop.f32.mrf.mxu1 }
 0x207   :  { %v703_v14 = vadd.f32 %v702_v24, %v569_v58  ;;  %v3852_v58 = vpop.f32.mrf.mxu0 }
 0x208   :  { %v2846_v52 = vpop.f32.mrf.mxu1 }
 0x209   :  { %v714_v50 = vadd.f32 %v2846_v52, %v2826_v4 }
 0x20a   :  { %v705_v3 = vpop.f32.mrf.mxu1 }
 0x20b   :  { %v706_v10 = vadd.f32 %v705_v3, %v572_v35 }
 0x20c   :  { %v2849_v29 = vpop.f32.mrf.mxu1 }
 0x20d   :  { %v727_v16 = vadd.f32 %v2849_v29, %v2829_v41 }
 0x20e   :  { %v718_v5 = vpop.f32.mrf.mxu1 }
 0x20f   :  { %v719_v20 = vadd.f32 %v718_v5, %v585_v51 }
 0x210   :  { %v2850_v43 = vpop.f32.mrf.mxu1 }
 0x211   :  { %v730_v53 = vadd.f32 %v2850_v43, %v2830_v62  ;;  %v3854_v62 = vpop.f32.mrf.mxu0 }
 0x212   :  { %v721_v23 = vpop.f32.mrf.mxu1 }
 0x213   :  { %v722_v28 = vadd.f32 %v721_v23, %v588_v2 }
 0x214   :  { %v2857_v48 = vpop.f32.mrf.mxu1 }
 0x215   :  { %v897_v56 = vadd.f32 %v2857_v48, %v679_v54 }
 0x216   :  { %v832_v59 = vpop.f32.mrf.mxu1 }
 0x217   :  { %v3832_v63 = vadd.f32 %v832_v59, %v671_v1  ;;  %v3856_v1 = vpop.f32.mrf.mxu0  ;;  %v1075_v59 = vadd.f32 %v3822_v7, %v897_v56  ;;  %v3121_v7 = vld [vmem:[%s4213_s6] sm:$0xff]  }
 0x218   :  { %v2858_v13 = vpop.f32.mrf.mxu1 }
 0x219   :  { %v3836_v17 = vadd.f32 %v2858_v13, %v682_v12  ;;  %v3858_v0 = vpop.f32.mrf.mxu0 }
 0x21a   :  { %v835_v27 = vpop.f32.mrf.mxu1 }
 0x21b   :  { %v3838_v32 = vadd.f32 %v835_v27, %v674_v39 }
 0x21c   :  { %v2861_v45 = vpop.f32.mrf.mxu1 }
 0x21d   :  { %v3842_v46 = vadd.f32 %v2861_v45, %v695_v25  ;;  %v3120_v45 = vld [vmem:[%s4213_s6 + $0x8] sm:$0xff]  }
 0x21e   :  { %v848_v57 = vpop.f32.mrf.mxu1  ;;  %3027 = vmatpush3.bf16.msra.mxu1 %v3120_v45 }
 0x21f   :  { %v3844_v61 = vadd.f32 %v848_v57, %v687_v38  ;;  %3028 = vmatprep.subr.bf16.mxu1 %v4221_v26 }
 0x220   :  { %v2862_v21 = vpop.f32.mrf.mxu1 }
 0x221   :  { %v3848_v34 = vadd.f32 %v2862_v21, %v698_v60  ;;  %v3860_v60 = vpop.f32.mrf.mxu0  ;;  %v1073_v21 = vadd.f32 %v3824_v42, %v3832_v63 }
 0x222   :  { %v851_v49 = vpop.f32.mrf.mxu1  ;;  %3029 = vmatpush3.bf16.msra.mxu1 %v3121_v7 }
 0x223   :  { %v3850_v40 = vadd.f32 %v851_v49, %v690_v22  ;;  %v3862_v24 = vpop.f32.mrf.mxu0 }
 0x224   :  { %v2865_v4 = vpop.f32.mrf.mxu1 }
 0x225   :  { %v905_v35 = vadd.f32 %v2865_v4, %v711_v55  ;;  %v1076_v4 = vadd.f32 %v3826_v30, %v3836_v17  ;;  %v1077_v30 = vadd.f32 %v3834_v8, %v3844_v61 }
 0x226   :  { %v864_v41 = vpop.f32.mrf.mxu1 }
 0x227   :  { %v903_v51 = vadd.f32 %v864_v41, %v703_v14 }
 0x228   :  { %v2866_v2 = vpop.f32.mrf.mxu1 }
 0x229   :  { %v906_v15 = vadd.f32 %v2866_v2, %v714_v50  ;;  %v1074_v2 = vadd.f32 %v3828_v18, %v3838_v32 }
 0x22a   :  { %v867_v54 = vpop.f32.mrf.mxu1 }
 0x22b   :  { %v904_v33 = vadd.f32 %v867_v54, %v706_v10  ;;  %v3864_v10 = vpop.f32.mrf.mxu0 }
 0x22c   :  { %v2869_v6 = vpop.f32.mrf.mxu1 }
 0x22d   :  { %v909_v12 = vadd.f32 %v2869_v6, %v727_v16  ;;  %v3868_v43 = vpop.f32.mrf.mxu0 }
 0x22e   :  { %v880_v19 = vpop.f32.mrf.mxu1 }
 0x22f   :  { %v907_v39 = vadd.f32 %v880_v19, %v719_v20  ;;  %v3875_v13 = vpop.f32.mrf.mxu0  ;;  %v1080_v19 = vadd.f32 %v3840_v37, %v3848_v34 }
 0x230   :  { %v2870_v25 = vpop.f32.mrf.mxu1 }
 0x231   :  { %v910_v44 = vadd.f32 %v2870_v25, %v730_v53 }
 0x232   :  { %v883_v38 = vpop.f32.mrf.mxu1 }
 0x233   :  { %v908_v47 = vadd.f32 %v883_v38, %v722_v28 }
 0x234   :  { %v2885_v9 = vpop.f32.mrf.mxu1 }
 0x235   :  { %v1083_v22 = vadd.f32 %v2885_v9, %v905_v35  ;;  %v3892_v35 = vpop.f32.mrf.mxu0 }
 0x236   :  { %v1042_v36 = vpop.f32.mrf.mxu1 }
 0x237   :  { %v1081_v55 = vadd.f32 %v1042_v36, %v903_v51  ;;  %v3898_v54 = vpop.f32.mrf.mxu0 }
 0x238   :  { %v2886_v14 = vpop.f32.mrf.mxu1 }
 0x239   :  { %v1084_v52 = vadd.f32 %v2886_v14, %v906_v15  ;;  %v1079_v15 = vadd.f32 %v3830_v31, %v3842_v46  ;;  %v1078_v31 = vadd.f32 %v3846_v11, %v3850_v40 }
 0x23a   :  { %v1045_v50 = vpop.f32.mrf.mxu1 }
 0x23b   :  { %v1082_v3 = vadd.f32 %v1045_v50, %v904_v33 }
 0x23c   :  { %v2889_v29 = vpop.f32.mrf.mxu1 }
 0x23d   :  { %v3866_v16 = vadd.f32 %v2889_v29, %v909_v12 }
 0x23e   :  { %v1058_v5 = vpop.f32.mrf.mxu1 }
 0x23f   :  { %v1085_v20 = vadd.f32 %v1058_v5, %v907_v39  ;;  %v3904_v39 = vpop.f32.mrf.mxu0 }
 0x240   :  { %v2890_v53 = vpop.f32.mrf.mxu1 }
 0x241   :  { %v3870_v23 = vadd.f32 %v2890_v53, %v910_v44  ;;  %v3912_v44 = vpop.f32.mrf.mxu0 }
 0x242   :  { %v1061_v28 = vpop.f32.mrf.mxu1 }
 0x243   :  { %v3872_v48 = vadd.f32 %v1061_v28, %v908_v47  ;;  %v3918_v37 = vpop.f32.mrf.mxu0 }
 0x244   :  { %v2897_v27 = vpop.f32.mrf.mxu1 }
 0x245   :  { %v1253_v57 = vadd.f32 %v2897_v27, %v1075_v59  ;;  %v3924_v11 = vpop.f32.mrf.mxu0 }
 0x246   :  { %v1188_v49 = vpop.f32.mrf.mxu1 }
 0x247   :  { %v1251_v56 = vadd.f32 %v1188_v49, %v1073_v21  ;;  %v3928_v5 = vpop.f32.mrf.mxu0 }
 0x248   :  { %v2898_v41 = vpop.f32.mrf.mxu1 }
 0x249   :  { %v1254_v51 = vadd.f32 %v2898_v41, %v1076_v4  ;;  %v3931_v28 = vpop.f32.mrf.mxu0 }
 0x24a   :  { %v1191_v42 = vpop.f32.mrf.mxu1  ;;  %4223 = vst [vmem:[#allocation6_spill] sm:$0xff] %v3931_v28 }
 0x24b   :  { %v1252_v63 = vadd.f32 %v1191_v42, %v1074_v2  ;;  %v1432_v21 = vadd.f32 %v3856_v1, %v1254_v51 }
 0x24c   :  { %v2901_v33 = vpop.f32.mrf.mxu1 }
 0x24d   :  { %v1257_v6 = vadd.f32 %v2901_v33, %v1079_v15  ;;  %v1430_v4 = vadd.f32 %v3858_v0, %v1252_v63 }
 0x24e   :  { %v1204_v17 = vpop.f32.mrf.mxu1 }
 0x24f   :  { %v1255_v12 = vadd.f32 %v1204_v17, %v1077_v30  ;;  %v1435_v41 = vadd.f32 %v3860_v60, %v1257_v6 }
 0x250   :  { %v2902_v18 = vpop.f32.mrf.mxu1 }
 0x251   :  { %v3906_v32 = vadd.f32 %v2902_v18, %v1080_v19  ;;  %v1433_v42 = vadd.f32 %v3862_v24, %v1255_v12 }
 0x252   :  { %v1207_v46 = vpop.f32.mrf.mxu1 }
 0x253   :  { %v3910_v25 = vadd.f32 %v1207_v46, %v1078_v31 }
 0x254   :  { %v2905_v38 = vpop.f32.mrf.mxu1 }
 0x255   :  { %v3914_v8 = vadd.f32 %v2905_v38, %v1083_v22 }
 0x256   :  { %v1220_v61 = vpop.f32.mrf.mxu1 }
 0x257   :  { %v3916_v47 = vadd.f32 %v1220_v61, %v1081_v55  ;;  %v1431_v55 = vadd.f32 %v3852_v58, %v1253_v57 }
 0x258   :  { %v2906_v34 = vpop.f32.mrf.mxu1 }
 0x259   :  { %v3920_v9 = vadd.f32 %v2906_v34, %v1084_v52 }
 0x25a   :  { %v1223_v36 = vpop.f32.mrf.mxu1 }
 0x25b   :  { %v3922_v14 = vadd.f32 %v1223_v36, %v1082_v3  ;;  %v1429_v3 = vadd.f32 %v3854_v62, %v1251_v56 }
 0x25c   :  { %v2909_v40 = vpop.f32.mrf.mxu1 }
 0x25e   :  { %v1236_v50 = vpop.f32.mrf.mxu1 }
 0x25f   :  { %v3926_v29 = vadd.f32 %v1236_v50, %v1085_v20  ;;  %v3939_v20 = vpop.f32.mrf.mxu0 }
 0x260   :  { %v2910_v22 = vpop.f32.mrf.mxu1  ;;  %4226 = vst [vmem:[#allocation9_spill] sm:$0xff] %v3939_v20 }
 0x261   :  { %v3947_v2 = vpop.f32.mrf.mxu0 }
 0x262   :  { %v1239_v53 = vpop.f32.mrf.mxu1 }
 0x263   :  { %v3954_v15 = vpop.f32.mrf.mxu0 }
 0x264   :  { %v2937_v59 = vpop.f32.mrf.mxu1  ;;  %4228 = vst [vmem:[#allocation11_spill] sm:$0xff] %v3954_v15 }
 0x265   :  { %v3933_v52 = vadd.f32 %v2937_v59, %v1431_v55  ;;  %v3960_v63 = vpop.f32.mrf.mxu0 }
 0x266   :  { %v1545_v27 = vpop.f32.mrf.mxu1 }
 0x267   :  { %4224 = vst [vmem:[#allocation7_spill] sm:$0xff] %v3933_v52  ;;  %v3936_v45 = vadd.f32 %v1545_v27, %v1429_v3  ;;  %v3964_v6 = vpop.f32.mrf.mxu0 }
 0x268   :  { %v2938_v49 = vpop.f32.mrf.mxu1 }
 0x269   :  { %4225 = vst [vmem:[#allocation8_spill] sm:$0xff] %v3936_v45  ;;  %v3941_v7 = vadd.f32 %v2938_v49, %v1432_v21  ;;  %v3966_v18 = vpop.f32.mrf.mxu0 }
 0x26a   :  { %v1548_v58 = vpop.f32.mrf.mxu1 }
 0x26b   :  { %v3944_v57 = vadd.f32 %v1548_v58, %v1430_v4  ;;  %v3968_v31 = vpop.f32.mrf.mxu0 }
 0x26c   :  { %v2941_v62 = vpop.f32.mrf.mxu1 }
 0x26d   :  { %4227 = vst [vmem:[#allocation10_spill] sm:$0xff] %v3944_v57  ;;  %v3949_v56 = vadd.f32 %v2941_v62, %v1435_v41  ;;  %v2965_v61 = vpop.f32.mrf.mxu0 }
 0x26e   :  { %v1561_v1 = vpop.f32.mrf.mxu1 }
 0x26f   :  { %v3952_v51 = vadd.f32 %v1561_v1, %v1433_v42  ;;  %v3974_v50 = vpop.f32.mrf.mxu0  ;;  %v1265_v42 = vadd.f32 %v2909_v40, %v3866_v16  ;;  %v1266_v1 = vadd.f32 %v2910_v22, %v3870_v23  ;;  %v1441_v16 = vadd.f32 %v3918_v37, %v3926_v29  ;;  %v4005_v29 = vld [vmem:[%s4212_s5] ss:$0 sm:$0xff] }
 0x270   :  { %v3956_v33 = vpop.f32.mrf.mxu1  ;;  %v1438_v37 = vadd.f32 %v3904_v39, %v3922_v14  ;;  %v1436_v14 = vadd.f32 %v3864_v10, %v3906_v32  ;;  %v1434_v10 = vadd.f32 %v3868_v43, %v3910_v25  ;;  %v1792_v43 = vadd.f32 %v3960_v63, %v3949_v56 }
 0x271   :  { %v2966_v3 = vpop.f32.mrf.mxu0  ;;  %v1443_v45 = vadd.f32 %v3912_v44, %v1265_v42  ;;  %v1444_v15 = vadd.f32 %v3924_v11, %v1266_v1  ;;  %v1439_v11 = vadd.f32 %v3875_v13, %v3914_v8  ;;  %v1437_v8 = vadd.f32 %v3892_v35, %v3916_v47 }
 0x272   :  { %v3958_v0 = vpop.f32.mrf.mxu1  ;;  %v1615_v35 = vadd.f32 %v3956_v33, %v1436_v14  ;;  %v1790_v56 = vadd.f32 %v3964_v6, %v3952_v51  ;;  %v4236_v51 = vld [vmem:[#allocation7_spill] sm:$0xff]  ;;  %v4237_v6 = vld [vmem:[#allocation6_spill] sm:$0xff] }
 0x273   :  { %v1758_v49 = vpop.f32.mrf.mxu0  ;;  %v1613_v33 = vadd.f32 %v3958_v0, %v1434_v10  ;;  %v3124_v10 = vld [vmem:[%s4208_s1 + $0x8] sm:$0xff]  }
 0x274   :  { %v2945_v30 = vpop.f32.mrf.mxu1 }
 0x275   :  { %v2969_v41 = vpop.f32.mrf.mxu0 }
 0x276   :  { %v3962_v60 = vpop.f32.mrf.mxu1 }
 0x278   :  { %v2946_v17 = vpop.f32.mrf.mxu1 }
 0x27a   :  { %v1580_v19 = vpop.f32.mrf.mxu1 }
 0x27c   :  { %v2949_v24 = vpop.f32.mrf.mxu1 }
 0x27e   :  { %v1593_v12 = vpop.f32.mrf.mxu1 }
 0x27f   :  { %v1620_v22 = vadd.f32 %v1593_v12, %v1441_v16 }
 0x280   :  { %v2950_v46 = vpop.f32.mrf.mxu1 }
 0x282   :  { %v1596_v38 = vpop.f32.mrf.mxu1 }
 0x284   :  { %v3970_v34 = vpop.f32.mrf.mxu1 }
 0x285   :  { %4229 = vst [vmem:[#allocation12_spill] sm:$0xff] %v3970_v34  ;;  %v1622_v34 = vadd.f32 %v2949_v24, %v1443_v45 }
 0x286   :  { %v3972_v36 = vpop.f32.mrf.mxu1 }
 0x287   :  { %4230 = vst [vmem:[#allocation13_spill] sm:$0xff] %v3972_v36  ;;  %v1264_v36 = vadd.f32 %v1239_v53, %v3872_v48  ;;  %v1440_v48 = vadd.f32 %v3898_v54, %v3920_v9  ;;  %v1800_v53 = vadd.f32 %v2969_v41, %v1622_v34  ;;  %v1618_v9 = vadd.f32 %v2945_v30, %v1439_v11 }
 0x288   :  { %v3976_v55 = vpop.f32.mrf.mxu1  ;;  %v4234_v30 = vmov 0.0   ;;  %v1616_v34 = vadd.f32 %v3962_v60, %v1437_v8  ;;  %v2143_v8 = vld [vmem:[%s4215_s8] sm:$0xf] }
 0x289   :  { %4231 = vst [vmem:[#allocation14_spill] sm:$0xff] %v3976_v55  ;;  %v1623_v55 = vadd.f32 %v2950_v46, %v1444_v15  ;;  %v1442_v28 = vadd.f32 %v3928_v5, %v1264_v36  ;;  %v1619_v15 = vadd.f32 %v2946_v17, %v1440_v48  ;;  %v1617_v17 = vadd.f32 %v1580_v19, %v1438_v37 }
 0x28a   :  { %v3978_v59 = vpop.f32.mrf.mxu1  ;;  %v1796_v36 = vadd.f32 %v2965_v61, %v1618_v9  ;;  %v1794_v32 = vadd.f32 %v3974_v50, %v1616_v34  ;;  %v1793_v61 = vadd.f32 %v3966_v18, %v1615_v35  ;;  %v2003_v9 = vld [vmem:[%s4217_s10] sm:$0x3] }
 0x28b   :  { %4232 = vst [vmem:[#allocation15_spill] sm:$0xff] %v3978_v59  ;;  %v1771_v59 = vpop.f32.mrf.mxu0  ;;  %v1621_v23 = vadd.f32 %v1596_v38, %v1442_v28  ;;  %v1797_v12 = vadd.f32 %v2966_v3, %v1619_v15  ;;  %v1795_v19 = vadd.f32 %v1758_v49, %v1617_v17  ;;  %v2157_v17 = vsel %vm2155_vm4, %v2143_v8, 0  ;;  %v3123_v35 = vld [vmem:[%s4208_s1] sm:$0xff]  }
 0x28c   :  { %v3980_v27 = vpop.f32.mrf.mxu1  ;;  %v1798_v28 = vadd.f32 %v1771_v59, %v1620_v22 }
 0x28d   :  { %v2970_v52 = vpop.f32.mrf.mxu0  ;;  %v1970_v0 = vadd.f32 %v3980_v27, %v1792_v43  ;;  %v3130_v43 = vld [vmem:[%s4208_s1 + $0x38] sm:$0xff]  }
 0x28e   :  { %v3982_v21 = vpop.f32.mrf.mxu1  ;;  %v1801_v44 = vadd.f32 %v2970_v52, %v1623_v55 }
 0x28f   :  { %4233 = vst [vmem:[#allocation16_spill] sm:$0xff] %v3982_v21  ;;  %v1774_v42 = vpop.f32.mrf.mxu0  ;;  %v4072_v27 = vadd.f32 %v4005_v29, %v1970_v0 }
 0x290   :  { %v3984_v4 = vpop.f32.mrf.mxu1  ;;  %v1799_v46 = vadd.f32 %v1774_v42, %v1621_v23  ;;  %v4240_v23 = vld [vmem:[#allocation10_spill] sm:$0xff] }
 0x291   :  { %v1971_v25 = vadd.f32 %v3984_v4, %v1793_v61  ;;  %v3128_v61 = vld [vmem:[%s4208_s1 + $0x28] sm:$0xff]  }
 0x292   :  { %v3986_v58 = vpop.f32.mrf.mxu1 }
 0x293   :  { %v4064_v63 = vadd.f32 %v4005_v29, %v1971_v25  ;;  %v2670_v25 = vld [vmem:[%s4216_s9] ss:$0 sm:$0xff] }
 0x294   :  { %v2985_v62 = vpop.f32.mrf.mxu1 }
 0x295   :  { %v1974_v47 = vadd.f32 %v2985_v62, %v1796_v36  ;;  %v1788_v62 = vadd.f32 %v4237_v6, %v4236_v51 }
 0x296   :  { %v1933_v26 = vpop.f32.mrf.mxu1  ;;  %v4235_v4 = vld [vmem:[#allocation16_spill] sm:$0xff] }
 0x297   :  { %v1972_v49 = vadd.f32 %v1933_v26, %v1794_v32  ;;  %v1791_v26 = vadd.f32 %v3968_v31, %v1613_v33  ;;  %v1789_v31 = vadd.f32 %v3947_v2, %v3941_v7  ;;  %v1968_v41 = vadd.f32 %v4235_v4, %v1790_v56  ;;  %v4239_v7 = vld [vmem:[#allocation12_spill] sm:$0xff]  ;;  %v3127_v33 = vld [vmem:[%s4208_s1 + $0x20] sm:$0xff]  }
 0x298   :  { %v2986_v20 = vpop.f32.mrf.mxu1  ;;  %v1966_v2 = vadd.f32 %v4239_v7, %v1788_v62  ;;  %v3125_v32 = vld [vmem:[%s4208_s1 + $0x10] sm:$0xff]  }
 0x299   :  { %v1975_v55 = vadd.f32 %v2986_v20, %v1797_v12  ;;  %v4057_v18 = vadd.f32 %v4005_v29, %v1972_v49  ;;  %v1969_v50 = vadd.f32 %v3986_v58, %v1791_v26  ;;  %v4238_v58 = vld [vmem:[#allocation14_spill] sm:$0xff]  ;;  %v4089_v22 = vadd.f32 %v4005_v29, %v1968_v41  ;;  %v3129_v49 = vld [vmem:[%s4208_s1 + $0x30] sm:$0xff]  }
 0x29a   :  { %v1936_v57 = vpop.f32.mrf.mxu1  ;;  %v1967_v1 = vadd.f32 %v4238_v58, %v1789_v31  ;;  %v3122_v12 = vld [vmem:[%s4218_s11] sm:$0xff]  }
 0x29b   :  { %v4035_v20 = vadd.f32 %v4005_v29, %v1975_v55  ;;  %v1973_v60 = vadd.f32 %v1936_v57, %v1795_v19  ;;  %v4081_v16 = vadd.f32 %v4005_v29, %v1969_v50 }
 0x29c   :  { %v2989_v21 = vpop.f32.mrf.mxu1  ;;  %v4096_v11 = vadd.f32 %v4005_v29, %v1967_v1 }
 0x29d   :  { %v1978_v5 = vadd.f32 %v2989_v21, %v1800_v53  ;;  %v4042_v21 = vadd.f32 %v4005_v29, %v1974_v47  ;;  %v4050_v57 = vadd.f32 %v4005_v29, %v1973_v60  ;;  %v4242_v53 = vld [vmem:[#allocation8_spill] sm:$0xff]  ;;  %v3126_v60 = vld [vmem:[%s4208_s1 + $0x18] sm:$0xff]  }
 0x29e   :  { %v1949_v40 = vpop.f32.mrf.mxu1 }
 0x29f   :  { %v4013_v38 = vadd.f32 %v4005_v29, %v1978_v5  ;;  %v1976_v39 = vadd.f32 %v1949_v40, %v1798_v28  ;;  %v4241_v40 = vld [vmem:[#allocation11_spill] sm:$0xff]  ;;  %v4102_v5 = vadd.f32 %v4005_v29, %v1966_v2 }
 0x2a0   :  { %v2990_v45 = vpop.f32.mrf.mxu1  ;;  %v1787_v48 = vadd.f32 %v4241_v40, %v4240_v23 }
 0x2a1   :  { %v1979_v24 = vadd.f32 %v2990_v45, %v1801_v44  ;;  %v4027_v3 = vadd.f32 %v4005_v29, %v1976_v39  ;;  %v4243_v44 = vld [vmem:[#allocation9_spill] sm:$0xff]  ;;  %v4244_v45 = vld [vmem:[#allocation15_spill] sm:$0xff]  ;;  %v2666_v39 = vld [vmem:[%s4214_s7] ss:$0 sm:$0xff] }
 0x2a2   :  { %v1952_v54 = vpop.f32.mrf.mxu1  ;;  %v1786_v42 = vadd.f32 %v4243_v44, %v4242_v53  ;;  %v1965_v15 = vadd.f32 %v4244_v45, %v1787_v48  ;;  %v3160_v44 = vmov 1966171168   ;;  %v2400_v45 = vlaneseq }
 0x2a3   :  { %v4008_v52 = vadd.f32 %v4005_v29, %v1979_v24  ;;  %v1977_v13 = vadd.f32 %v1952_v54, %v1799_v46  ;;  %v4245_v24 = vld [vmem:[#allocation13_spill] sm:$0xff] }
 0x2a4   :  { %v1964_v46 = vadd.f32 %v4245_v24, %v1786_v42  ;;  %v4108_v37 = vadd.f32 %v4005_v29, %v1965_v15  ;;  %v2398_v42 = vunpack.c.l.s4 %v3160_v44 }
 0x2a5   :  { %2992 = vmatpush3.msra.mxu0 %v4008_v52  ;;  %v4021_v59 = vadd.f32 %v4005_v29, %v1977_v13 }
 0x2a6   :  { %2993 = vmatprep.subr.mxu0 %v4234_v30  ;;  %v4113_v54 = vadd.f32 %v4005_v29, %v1964_v46  ;;  %v2399_v46 = vunpack.c.0.s8 %v2398_v42 }
 0x2a7   :  { %2994 = vmatpush3.msra.mxu0 %v4013_v38 }
 0x2a8   :  { %2995 = vmatprep.subr.mxu0 %v4234_v30 }
 0x2a9   :  { %2996 = vmatpush3.msra.mxu0 %v4021_v59 }
 0x2aa   :  { %2997 = vmatprep.subr.mxu0 %v4234_v30 }
 0x2ab   :  { %2998 = vmatpush3.msra.mxu0 %v4027_v3 }
 0x2ac   :  { %2999 = vmatprep.subr.mxu0 %v4234_v30 }
 0x2ad   :  { %3000 = vmatpush3.msra.mxu0 %v4035_v20 }
 0x2ae   :  { %3001 = vmatprep.subr.mxu0 %v4234_v30 }
 0x2af   :  { %3002 = vmatpush3.msra.mxu0 %v4042_v21 }
 0x2b0   :  { %3003 = vmatprep.subr.mxu0 %v4234_v30 }
 0x2b1   :  { %3004 = vmatpush3.msra.mxu0 %v4050_v57 }
 0x2b2   :  { %3005 = vmatprep.subr.mxu0 %v4234_v30 }
 0x2b3   :  { %3006 = vmatpush3.msra.mxu0 %v4057_v18 }
 0x2b4   :  { %3007 = vmatprep.subr.mxu0 %v4234_v30 }
 0x2b5   :  { %3008 = vmatpush3.msra.mxu0 %v4064_v63 }
 0x2b6   :  { %3009 = vmatprep.subr.mxu0 %v4234_v30 }
 0x2b7   :  { %3010 = vmatpush3.msra.mxu0 %v4072_v27 }
 0x2b8   :  { %3011 = vmatprep.subr.mxu0 %v4234_v30 }
 0x2b9   :  { %3012 = vmatpush3.msra.mxu0 %v4081_v16 }
 0x2ba   :  { %3013 = vmatprep.subr.mxu0 %v4234_v30 }
 0x2bb   :  { %3014 = vmatpush3.msra.mxu0 %v4089_v22 }
 0x2bc   :  { %3015 = vmatprep.subr.mxu0 %v4234_v30 }
 0x2bd   :  { %3016 = vmatpush3.msra.mxu0 %v4096_v11 }
 0x2be   :  { %3017 = vmatprep.subr.mxu0 %v4234_v30 }
 0x2bf   :  { %3018 = vmatpush3.msra.mxu0 %v4102_v5 }
 0x2c0   :  { %3019 = vmatprep.subr.mxu0 %v4234_v30 }
 0x2c1   :  { %3020 = vmatpush3.msra.mxu0 %v4108_v37 }
 0x2c2   :  { %3021 = vmatprep.subr.mxu0 %v4234_v30 }
 0x2c3   :  { %3022 = vmatpush3.msra.mxu0 %v4113_v54 }
 0x2c4   :  { %3024 = vmatmul.mubr.f32.vlgmr.msra.gmra.mxu0 %v2003_v9  ;;  %3034 = vmatprep.subr.bf16.mxu0 %v4234_v30  ;;  %v2401_v9 = vshrl.u32 %v2400_v45, 7 }
 0x2c5   :  { %3036 = vmatprep.mubr.msk.bf16.mxu0 %vm3159_vm3, %v4234_v30  ;;  %3035 = vmatpush3.bf16.msra.mxu0 %v2157_v17  ;;  %v2672_v17 = vld [vmem:[%s4219_s12] ss:$0 sm:$0xff]  ;;  %s3161_s12 = smov [#allocation3]  }
 0x2c6   :  { %3040 = vmatprep.subr.bf16.mxu0 %v3122_v12  ;;  %s2498_s22 = sshll.u32 %s3161_s12, 4  ;;  %s2499_s22 = int_to_ptr.vmem [resolvable:$true] %s2498_s22 }
 0x2c7   :  { %s3135_s5 = scalar_lea.vmem %s2499_s22, 2048  ;;  %p3140_p1 = scmp.lt.s32.totalorder %s2499_s22, %s2499_s22 }
 0x2c8   :  { %p3136_p0 = scmp.ne.s32.totalorder %s2499_s22, %s3135_s5  ;;  %p3141_p2 = scmp.lt.s32.totalorder %s3135_s5, %s3135_s5 }
 0x2ca   :  { %p3142_p3 = por %p3141_p2, %p3140_p1 }
 0x2cc   :  { %p3143_p4 = pnand %p3142_p3, %p3136_p0 }
 0x384   :  { %v2070_v28 = vpop.f32.mrf.mxu0 }
 0x385   :  { %v2074_v13 = vpack.c.bf16 %v2070_v28, %v2070_v28 }
 0x386   :  { %v3025_v29 = vpop.f32.mrf.mxu0 }
 0x387   :  { %3031 = vmatmul.mubr.msk.bf16.vlgmr.msra.gmra.mxu1 %vm351_vm1, %v2074_v13  ;;  %v2402_v29 = vsub.s32 %v2399_v46, %v2401_v9 }
 0x447   :  { %v2135_v14 = vpop.f32.mrf.mxu1 }
 0x448   :  { %v2136_v30 = vadd.f32 %v2666_v39, %v2135_v14 }
 0x449   :  { %v3032_v34 = vpop.f32.mrf.mxu1 }
 0x44a   :  { %v2141_v36 = vmax.f32 %v2136_v30, 0.0  ;;  %v2421_v30 = vsub.s32 0, %v2401_v9 }
 0x44b   :  { %v2138_v55 = vpop.f32.mrf.mxu1 }
 0x44c   :  { %v2142_v47 = vpack.c.bf16 %v2141_v36, %v2141_v36 }
 0x44d   :  { %v3033_v19 = vpop.f32.mrf.mxu1 }
 0x44e   :  { %3037 = vmatmul.mubr.msk.bf16.vlgmr.msra.gmra.mxu0 %vm2151_vm5, %v2142_v47 }
 0x44f   :  { %3041 = vmatpush3.bf16.msra.mxu0 %v3122_v12  ;;  %3042 = vmatprep.mubr.msk.bf16.mxu0 %vm213_vm0, %v3123_v35 }
 0x456   :  { %3043 = vmatmul.mubr.msk.bf16.vlgmr.msra.gmra.mxu0 %vm213_vm0, %v3124_v10 }
 0x457   :  { %3046 = vmatprep.mubr.msk.bf16.mxu0 %vm213_vm0, %v3125_v32 }
 0x45e   :  { %3047 = vmatmul.mubr.msk.bf16.gmra.mxu0 %vm213_vm0, %v3126_v60 }
 0x45f   :  { %3050 = vmatprep.mubr.msk.bf16.mxu0 %vm213_vm0, %v3127_v33 }
 0x466   :  { %3051 = vmatmul.mubr.msk.bf16.gmra.mxu0 %vm213_vm0, %v3128_v61 }
 0x467   :  { %3054 = vmatprep.mubr.msk.bf16.mxu0 %vm213_vm0, %v3129_v49 }
 0x46e   :  { %3055 = vmatmul.mubr.msk.bf16.gmra.mxu0 %vm213_vm0, %v3130_v43 }
 0x50e   :  { %v2193_v0 = vpop.f32.mrf.mxu0 }
 0x50f   :  { %v2194_v26 = vadd.f32 %v2670_v25, %v2193_v0 }
 0x510   :  { %v3038_v56 = vpop.f32.mrf.mxu0 }
 0x511   :  { %v2199_v50 = vsub.f32 0.0, %v2194_v26 }
 0x512   :  { %v2196_v31 = vpop.f32.mrf.mxu0 }
 0x513   :  { %v2200_v4 = vmul.f32 1.442695, %v2199_v50 }
 0x514   :  { %v3039_v41 = vpop.f32.mrf.mxu0 }
 0x515   :  { %3131 = vpow2.f32 %v2200_v4 }
 0x516   :  { %v3044_v51 = vpop.f32.mrf.mxu0 }
 0x517   :  { %v2342_v34 = vadd.f32 %v3044_v51, %v2672_v17 }
 0x518   :  { %v2333_v6 = vpop.f32.mrf.mxu0 }
 0x519   :  { %v2334_v36 = vadd.f32 %v2672_v17, %v2333_v6 }
 0x51a   :  { %v3045_v62 = vpop.f32.mrf.mxu0 }
 0x51b   :  { %v2345_v55 = vadd.f32 %v3045_v62, %v2672_v17 }
 0x51c   :  { %v2336_v58 = vpop.f32.mrf.mxu0 }
 0x51d   :  { %v2337_v35 = vadd.f32 %v2672_v17, %v2336_v58 }
 0x51e   :  { %v3048_v1 = vpop.f32.mrf.mxu0 }
 0x51f   :  { %v2358_v10 = vadd.f32 %v3048_v1, %v2672_v17 }
 0x520   :  { %v2349_v7 = vpop.f32.mrf.mxu0 }
 0x521   :  { %v2350_v32 = vadd.f32 %v2672_v17, %v2349_v7 }
 0x522   :  { %v3132_v2 = vpop.eup %3131  ;;  %v3049_v23 = vpop.f32.mrf.mxu0 }
 0x523   :  { %v2202_v40 = vadd.f32 1.0, %v3132_v2  ;;  %v2361_v33 = vadd.f32 %v3049_v23, %v2672_v17 }
 0x524   :  { %v2352_v48 = vpop.f32.mrf.mxu0 }
 0x525   :  { %3133 = vrcp.f32 %v2202_v40  ;;  %v2353_v61 = vadd.f32 %v2672_v17, %v2352_v48 }
 0x526   :  { %v3052_v53 = vpop.f32.mrf.mxu0 }
 0x527   :  { %v2374_v49 = vadd.f32 %v3052_v53, %v2672_v17 }
 0x528   :  { %v2365_v15 = vpop.f32.mrf.mxu0 }
 0x529   :  { %v2366_v43 = vadd.f32 %v2672_v17, %v2365_v15 }
 0x52a   :  { %v3053_v24 = vpop.f32.mrf.mxu0 }
 0x52b   :  { %v2377_v26 = vadd.f32 %v3053_v24, %v2672_v17 }
 0x52c   :  { %v2368_v28 = vpop.f32.mrf.mxu0 }
 0x52d   :  { %v2369_v56 = vadd.f32 %v2672_v17, %v2368_v28 }
 0x52e   :  { %v3056_v13 = vpop.f32.mrf.mxu0 }
 0x52f   :  { %v2390_v50 = vadd.f32 %v3056_v13, %v2672_v17 }
 0x530   :  { %v2381_v8 = vpop.f32.mrf.mxu0 }
 0x531   :  { %v2382_v31 = vadd.f32 %v2672_v17, %v2381_v8 }
 0x532   :  { %v3134_v12 = vpop.eup %3133  ;;  %v3057_v39 = vpop.f32.mrf.mxu0 }
 0x533   :  { %v2403_v14 = vrot.slane %v3134_v12, %v2402_v29  ;;  %v2393_v4 = vadd.f32 %v3057_v39, %v2672_v17 }
 0x534   :  { %v2384_v60 = vpop.f32.mrf.mxu0 }
 0x535   :  { %v2404_v47 = vcombine.high %v2403_v14, %v2403_v14  ;;  %v2411_v19 = vrot.slane %v2403_v14, %v2402_v29  ;;  %v2385_v41 = vadd.f32 %v2672_v17, %v2384_v60 }
 0x537   :  { %v2418_v25 = vrot.slane %v2404_v47, %v2402_v29  ;;  %v2422_v0 = vrot.slane %v2411_v19, %v2421_v30 }
 0x539   :  { %v2426_v51 = vrot.slane %v2418_v25, %v2421_v30  ;;  %v2431_v6 = vmul.f32 %v2422_v0, %v4102_v5  ;;  %v2429_v62 = vmul.f32 %v2422_v0, %v4113_v54  ;;  %v2432_v58 = vmul.f32 %v2422_v0, %v4096_v11 }
 0x53a   :  { %v2430_v1 = vmul.f32 %v2422_v0, %v4108_v37  ;;  %v2435_v7 = vmul.f32 %v2422_v0, %v4072_v27  ;;  %v2433_v2 = vmul.f32 %v2422_v0, %v4089_v22  ;;  %v2436_v23 = vmul.f32 %v2422_v0, %v4064_v63 }
 0x53b   :  { %v2447_v40 = vadd.f32 %v2431_v6, %v2342_v34  ;;  %v2445_v48 = vadd.f32 %v2429_v62, %v2334_v36  ;;  %v2448_v53 = vadd.f32 %v2432_v58, %v2345_v55  ;;  %v2434_v44 = vmul.f32 %v2422_v0, %v4081_v16 }
 0x53c   :  { %v2446_v42 = vadd.f32 %v2430_v1, %v2337_v35  ;;  %v2451_v45 = vadd.f32 %v2435_v7, %v2358_v10  ;;  %v2449_v5 = vadd.f32 %v2433_v2, %v2350_v32  ;;  %v2452_v15 = vadd.f32 %v2436_v23, %v2361_v33 }
 0x53d   :  { %v2463_v54 = vmax.f32 %v2447_v40, 0.0  ;;  %v2461_v24 = vmax.f32 %v2445_v48, 0.0  ;;  %v2464_v11 = vmax.f32 %v2448_v53, 0.0  ;;  %v2450_v46 = vadd.f32 %v2434_v44, %v2353_v61 }
 0x53e   :  { %v2462_v37 = vmax.f32 %v2446_v42, 0.0  ;;  %v2467_v9 = vmax.f32 %v2451_v45, 0.0  ;;  %v2465_v27 = vmax.f32 %v2449_v5, 0.0  ;;  %v2468_v28 = vmax.f32 %v2452_v15, 0.0 }
 0x53f   :  { %2479 = vst.msk [vmem:[#allocation3 + $0x10] sm:$0xff] %vm351_vm1, %v2463_v54  ;;  %2477 = vst.msk [vmem:[#allocation3] sm:$0xff] %vm351_vm1, %v2461_v24  ;;  %v2466_v63 = vmax.f32 %v2450_v46, 0.0  ;;  %v2439_v16 = vmul.f32 %v2426_v51, %v4042_v21  ;;  %v2437_v22 = vmul.f32 %v2426_v51, %v4057_v18  ;;  %v2440_v13 = vmul.f32 %v2426_v51, %v4035_v20 }
 0x540   :  { %2480 = vst.msk [vmem:[#allocation3 + $0x18] sm:$0xff] %vm351_vm1, %v2464_v11  ;;  %2478 = vst.msk [vmem:[#allocation3 + $0x8] sm:$0xff] %vm351_vm1, %v2462_v37  ;;  %v2438_v29 = vmul.f32 %v2426_v51, %v4050_v57  ;;  %v2443_v8 = vmul.f32 %v2426_v51, %v4013_v38  ;;  %v2441_v17 = vmul.f32 %v2426_v51, %v4027_v3 }
 0x541   :  { %2483 = vst.msk [vmem:[#allocation3 + $0x30] sm:$0xff] %vm351_vm1, %v2467_v9  ;;  %2481 = vst.msk [vmem:[#allocation3 + $0x20] sm:$0xff] %vm351_vm1, %v2465_v27  ;;  %v2444_v21 = vmul.f32 %v2426_v51, %v4008_v52  ;;  %v2455_v18 = vadd.f32 %v2439_v16, %v2374_v49  ;;  %v2453_v20 = vadd.f32 %v2437_v22, %v2366_v43 }
 0x542   :  { %2484 = vst.msk [vmem:[#allocation3 + $0x38] sm:$0xff] %vm351_vm1, %v2468_v28  ;;  %2482 = vst.msk [vmem:[#allocation3 + $0x28] sm:$0xff] %vm351_vm1, %v2466_v63  ;;  %v2456_v12 = vadd.f32 %v2440_v13, %v2377_v26  ;;  %v2442_v39 = vmul.f32 %v2426_v51, %v4021_v59  ;;  %v2454_v14 = vadd.f32 %v2438_v29, %v2369_v56 }
 0x543   :  { %v2459_v30 = vadd.f32 %v2443_v8, %v2390_v50  ;;  %v2457_v34 = vadd.f32 %v2441_v17, %v2382_v31  ;;  %v2460_v36 = vadd.f32 %v2444_v21, %v2393_v4  ;;  %v2471_v57 = vmax.f32 %v2455_v18, 0.0 }
 0x544   :  { %v2469_v55 = vmax.f32 %v2453_v20, 0.0  ;;  %v2472_v38 = vmax.f32 %v2456_v12, 0.0  ;;  %v2458_v35 = vadd.f32 %v2442_v39, %v2385_v41  ;;  %v2470_v3 = vmax.f32 %v2454_v14, 0.0 }
 0x545   :  { %v2475_v47 = vmax.f32 %v2459_v30, 0.0  ;;  %v2473_v52 = vmax.f32 %v2457_v34, 0.0  ;;  %v2476_v19 = vmax.f32 %v2460_v36, 0.0  ;;  %2487 = vst.msk [vmem:[#allocation3 + $0x50] sm:$0xff] %vm351_vm1, %v2471_v57 }
 0x546   :  { %2485 = vst.msk [vmem:[#allocation3 + $0x40] sm:$0xff] %vm351_vm1, %v2469_v55  ;;  %2488 = vst.msk [vmem:[#allocation3 + $0x58] sm:$0xff] %vm351_vm1, %v2472_v38  ;;  %v2474_v59 = vmax.f32 %v2458_v35, 0.0 }
 0x547   :  { %2486 = vst.msk [vmem:[#allocation3 + $0x48] sm:$0xff] %vm351_vm1, %v2470_v3  ;;  %2491 = vst.msk [vmem:[#allocation3 + $0x70] sm:$0xff] %vm351_vm1, %v2475_v47 }
 0x548   :  { %2489 = vst.msk [vmem:[#allocation3 + $0x60] sm:$0xff] %vm351_vm1, %v2473_v52  ;;  %2492 = vst.msk [vmem:[#allocation3 + $0x78] sm:$0xff] %vm351_vm1, %v2476_v19 }
 0x549   :  { %2490 = vst.msk [vmem:[#allocation3 + $0x68] sm:$0xff] %vm351_vm1, %v2474_v59 }
 0x54a   :  { %3146 = shalt.err (!%p3143_p4)
}
 0x54b   :  { %s3162_s23 = smov 128   ;;  %s3163_s24 = smov 8  }
 0x54c   :  { %2504 = dma.vmem_to_hbm [thread:$0]  %s2499_s22, 2048, %s4220_s13, [#allocation4], %s3162_s23, %s3162_s23, %s3163_s24  }
 0x54d   :  { %3155 = dma.done.wait [#allocation4], 2048  }
 0x54e   :  { %3156 = vsyncadd [#allocation4], 4294965248 }
 0x54f   :  { %2508 = vsyncpa [#allocation4], 1 }

</bundles_post_ra>
